<compile_context>
chip_gen: v6e
topology: v6e:2x2x1
jax: 0.10.0
libtpu: 0.0.40
codegen_flags: <defaults>
</compile_context>

<pallas_src>
from functools import partial

import numpy as np
import jax
import jax.numpy as jnp
from jax import lax
from jax.experimental import pallas as pl
from jax.experimental.pallas import tpu as pltpu

M_MARGIN = 0.2
GAMMA = 64.0
TOPK = 10
NEG_TOPK_THRESHOLD = 20

_LANE = 128
_ROW_TILE = 32                       # int8 sublane packing; also multiple of bf16(16)/f32(8)
_VMEM_LIMIT = 48 * 1024 * 1024       # explicit scoped-VMEM budget, safe on v5e/v6e/v7x


def ranking_loss_kernel(sim_ref, code_ref, out_ref, lse_n_sc, *, include_topk):
    sim = sim_ref[...].astype(jnp.float32)     # (TB, Np) f32 math, bf16 at the boundary
    code = code_ref[...].astype(jnp.int32)     # int8 -> int32 unpack (cheap, robust)
    neg_inf = jnp.float32(-jnp.inf)

    pos_mask = code == 1
    neg_mask = code == 2

    # ---- positive branch: logit_p = -clamp(0.8 - s, 0) * (s - 0.8) * gamma ----------
    # masking fused directly into the logit (single where, no re-mask in the LSE)
    logit_p = jnp.where(pos_mask,
                        jnp.maximum(0.8 - sim, 0.0) * (0.8 - sim) * GAMMA,
                        neg_inf)
    mx_p = jnp.max(logit_p, axis=-1, keepdims=True)            # -inf <=> no positives
    mx_p_safe = jnp.where(mx_p == neg_inf, 0.0, mx_p)
    lse_p = mx_p_safe + jnp.log(
        jnp.sum(jnp.exp(logit_p - mx_p_safe), axis=-1, keepdims=True))
    # torch path: no positives -> logit_p = scalar 0 -> logsumexp = 0
    lse_p = jnp.where(mx_p == neg_inf, 0.0, lse_p)

    # ---- negative branch over ALL negatives ------------------------------------------
    # logit_n is monotone non-decreasing in sim, so the row max of the neg-masked sim
    # gives the max logit m_n directly; work0 / v_max are reused by the top-k path.
    work0 = jnp.where(neg_mask, sim, neg_inf)                   # (TB, Np)
    v_max = jnp.max(work0, axis=-1, keepdims=True)              # -inf iff no negatives
    v_safe = jnp.maximum(v_max, 0.2)
    m_n = (v_safe - 0.2) * (v_safe - 0.2) * GAMMA               # max logit_n (0 if none)

    logit_n = jnp.maximum(sim - 0.2, 0.0) * (sim - 0.2) * GAMMA
    s_n = jnp.sum(jnp.exp(jnp.where(neg_mask, logit_n, neg_inf) - m_n),
                  axis=-1, keepdims=True)
    lse_n_all = m_n + jnp.log(s_n)                              # -inf iff no negatives
    neg_count = jnp.sum(neg_mask.astype(jnp.float32), axis=-1, keepdims=True)

    lse_n_sc[...] = lse_n_all

    # ---- top-10-negatives path (torch.topk(10) emulation) -----------------------------
    if include_topk:                      # compiled out when N <= 20 (can never trigger)
        needs_topk = jnp.any(neg_count > float(NEG_TOPK_THRESHOLD))

        @pl.when(needs_topk)
        def _():
            # first extraction IS v_max, so m_n is already the max logit of the top-10
            # set; remove ALL ties per step and clamp the multiplicity to the remaining
            # budget -> multiset-identical to torch.topk(10).
            hit0 = work0 == v_max
            tie0 = jnp.sum(hit0.astype(jnp.float32), axis=-1, keepdims=True)
            take0 = jnp.minimum(tie0, float(TOPK))
            run_s0 = take0                                      # exp(m_n - m_n) == 1
            work1 = jnp.where(hit0, neg_inf, work0)

            def body(_, carry):
                work, run_s, taken = carry
                v = jnp.max(work, axis=-1, keepdims=True)
                hit = work == v
                tie = jnp.sum(hit.astype(jnp.float32), axis=-1, keepdims=True)
                take = jnp.minimum(tie, jnp.maximum(float(TOPK) - taken, 0.0))
                v_s = jnp.maximum(v, 0.2)
                logit_t = (v_s - 0.2) * (v_s - 0.2) * GAMMA
                run_s = run_s + take * jnp.exp(logit_t - m_n)   # exp(...) <= 1
                taken = taken + take
                work = jnp.where(hit, neg_inf, work)
                return work, run_s, taken

            _, run_s, _ = lax.fori_loop(1, TOPK, body, (work1, run_s0, take0),
                                        unroll=True)
            lse_n_top = m_n + jnp.log(run_s)
            lse_n_sc[...] = jnp.where(neg_count > float(NEG_TOPK_THRESHOLD),
                                      lse_n_top, lse_n_all)

    # ---- softplus(lse_n + lse_p), partial sum over this batch tile --------------------
    z = lse_n_sc[...] + lse_p
    # stable softplus; padded rows (no pos, no neg) give z = -inf -> contribution 0
    sp = jnp.maximum(z, 0.0) + jnp.log1p(jnp.exp(-jnp.abs(z)))  # (TB, 1)
    out_ref[0] = jnp.sum(sp, axis=0, keepdims=True)             # (1, 1) partial sum


def _round_up(x, m):
    return ((x + m - 1) // m) * m


def _choose_tb(b, n_pad):
    # ~1 MiB of bf16 sim per block; 2 inputs x 2 pipeline buffers stays tiny, f32
    # intermediates of the same tile stay well inside the explicit 48 MiB VMEM budget.
    target_sim_bytes = 1 << 20
    tb = (target_sim_bytes // max(1, n_pad * 2)) // _ROW_TILE * _ROW_TILE
    tb = max(_ROW_TILE, min(tb, 2048))
    b_min = _round_up(b, _ROW_TILE)
    tb = min(tb, b_min)
    # v7x megacore: keep >= 2 grid steps whenever the padded batch allows it.
    if b_min >= 2 * _ROW_TILE:
        tb = min(tb, max(_ROW_TILE, (b_min // 2) // _ROW_TILE * _ROW_TILE))
    return tb


def ranking_loss(sim, label):
    B, N = sim.shape
    n_pad = _round_up(N, _LANE)
    tb = _choose_tb(B, n_pad)
    b_pad = _round_up(B, tb)

    # pipeline buffers (2x each input) + ~10 live f32 (tb, n_pad) intermediates
    est_vmem = 2 * tb * n_pad * (2 + 1) + 10 * tb * n_pad * 4
    if est_vmem > _VMEM_LIMIT:
        # TODO(synk): add an N-tiled (online-LSE + running-top10) variant for very large
        # N; a single 32-row block plus f32 intermediates exceeds the VMEM budget.
        raise NotImplementedError(f"N={N} too large for the single-row-block kernel")

    # Narrow boundary dtypes: bf16 similarities + int8 label codes (1=pos, 2=neg, 0=ignore).
    sim_b = sim.astype(jnp.bfloat16)
    labf = label.astype(jnp.float32)
    code = (labf > 0.5).astype(jnp.int8) + 2 * (labf < 0.25).astype(jnp.int8)

    if (b_pad, n_pad) != (B, N):
        sim_b = jnp.pad(sim_b, ((0, b_pad - B), (0, n_pad - N)))
        code = jnp.pad(code, ((0, b_pad - B), (0, n_pad - N)))   # pad code 0 = ignore

    grid = (b_pad // tb,)
    kernel = partial(ranking_loss_kernel, include_topk=bool(N > NEG_TOPK_THRESHOLD))
    partial_sums = pl.pallas_call(
        kernel,
        out_shape=jax.ShapeDtypeStruct((grid[0], 1, 1), jnp.float32),
        grid=grid,
        in_specs=[
            pl.BlockSpec((tb, n_pad), lambda i: (i, 0)),
            pl.BlockSpec((tb, n_pad), lambda i: (i, 0)),
        ],
        out_specs=pl.BlockSpec((1, 1, 1), lambda i: (i, 0, 0)),
        scratch_shapes=[pltpu.VMEM((tb, 1), jnp.float32)],
        compiler_params=pltpu.CompilerParams(
            dimension_semantics=("parallel",),
            vmem_limit_bytes=_VMEM_LIMIT),
    )(sim_b, code)
    # per-block partial sums -> mean over the TRUE batch size
    return jnp.sum(partial_sums) / jnp.float32(B)


def ref_ranking_loss(sim, label, m=M_MARGIN, gamma=GAMMA):
    """Pure numpy reference mirroring the PyTorch module exactly."""
    def lse(x):
        if x.size == 0:
            return -np.inf
        mx = np.max(x)
        return mx + np.log(np.sum(np.exp(x - mx)))

    B = label.shape[0]
    delta_p, delta_n = 1.0 - m, m
    total = 0.0
    for i in range(B):
        lab, s = label[i], sim[i]
        pos = s[lab > 0.5]
        if pos.size > 0:
            ap = np.clip(0.8 - pos, 0.0, None)
            lse_p = lse(-ap * (pos - delta_p) * gamma)
        else:
            lse_p = 0.0
        neg = s[lab < 0.25]
        if neg.size > NEG_TOPK_THRESHOLD:
            neg = np.sort(neg)[-TOPK:]
        an = np.clip(neg - 0.2, 0.0, None)
        lse_n = lse(an * (neg - delta_n) * gamma)
        z = lse_n + lse_p
        total += max(z, 0.0) + np.log1p(np.exp(-abs(z)))  # stable softplus
    return total / B


if __name__ == "__main__":
    key = jax.random.PRNGKey(0)
    B, N = 2, 32
    sim = jax.random.uniform(key, (B, N), dtype=jnp.float32)

    # Deterministic labels exercising every branch:
    #  row 0: 4 positives, 4 "ignored", 24 negatives (>20 -> top-10 path)
    #  row 1: no positives (logit_p = 0 branch), 10 negatives (<=20 -> full path)
    label_np = np.zeros((B, N), dtype=np.float32)
    label_np[0, :4] = 1.0
    label_np[0, 4:8] = 0.4
    label_np[1, :22] = 0.4
    label = jnp.asarray(label_np)

    out = jax.block_until_ready(ranking_loss(sim, label))

    # The kernel consumes bf16 similarities at the HBM boundary; compare against the
    # reference evaluated on exactly those bf16-rounded values.
    sim_bf = np.asarray(sim.astype(jnp.bfloat16).astype(jnp.float32))
    ref = ref_ranking_loss(sim_bf, label_np)
    assert np.isfinite(float(out)), f"non-finite loss: {float(out)}"
    assert np.allclose(float(out), ref, rtol=1e-3, atol=1e-3), (float(out), ref)
    print("KERNEL_OK")
</pallas_src>

<mosaic_0001>
module attributes {stable_mosaic.version = 11 : i64} {
  func.func @ranking_loss_kernel(%arg0: i32, %arg1: memref<32x128xbf16, #tpu.memory_space<vmem>>, %arg2: memref<32x128xi8, #tpu.memory_space<vmem>>, %arg3: memref<1x1x1xf32, #tpu.memory_space<vmem>>, %arg4: memref<32x1xf32, #tpu.memory_space<vmem>>) attributes {dimension_semantics = [#tpu.dimension_semantics<parallel>], iteration_bounds = array<i64: 1>, scalar_prefetch = 0 : i64, scratch_operands = 1 : i64, tpu.core_type = #tpu.core_type<tc>, window_params = [{transform_indices = @transform_0, window_bounds = array<i64: 32, 128>}, {transform_indices = @transform_1, window_bounds = array<i64: 32, 128>}, {transform_indices = @transform_2, window_bounds = array<i64: 1, 1, 1>}]} {
    %c0 = arith.constant 0 : index
    %c0_0 = arith.constant 0 : index
    %0 = vector.load %arg1[%c0, %c0_0] : memref<32x128xbf16, #tpu.memory_space<vmem>>, vector<32x128xbf16>
    %1 = arith.extf %0 : vector<32x128xbf16> to vector<32x128xf32>
    %c0_1 = arith.constant 0 : index
    %c0_2 = arith.constant 0 : index
    %2 = vector.load %arg2[%c0_1, %c0_2] : memref<32x128xi8, #tpu.memory_space<vmem>>, vector<32x128xi8>
    %3 = arith.extsi %2 : vector<32x128xi8> to vector<32x128xi32>
    %c1_i32 = arith.constant 1 : i32
    %4 = vector.broadcast %c1_i32 : i32 to vector<32x128xi32>
    %5 = arith.cmpi eq, %3, %4 : vector<32x128xi32>
    %c2_i32 = arith.constant 2 : i32
    %6 = vector.broadcast %c2_i32 : i32 to vector<32x128xi32>
    %7 = arith.cmpi eq, %3, %6 : vector<32x128xi32>
    %cst = arith.constant 8.000000e-01 : f32
    %8 = vector.broadcast %cst : f32 to vector<32x128xf32>
    %9 = arith.subf %8, %1 : vector<32x128xf32>
    %cst_3 = arith.constant 0.000000e+00 : f32
    %10 = vector.broadcast %cst_3 : f32 to vector<32x128xf32>
    %11 = arith.maximumf %9, %10 : vector<32x128xf32>
    %cst_4 = arith.constant 8.000000e-01 : f32
    %12 = vector.broadcast %cst_4 : f32 to vector<32x128xf32>
    %13 = arith.subf %12, %1 : vector<32x128xf32>
    %14 = arith.mulf %11, %13 : vector<32x128xf32>
    %cst_5 = arith.constant 6.400000e+01 : f32
    %15 = vector.broadcast %cst_5 : f32 to vector<32x128xf32>
    %16 = arith.mulf %14, %15 : vector<32x128xf32>
    %cst_6 = arith.constant 0xFF800000 : f32
    %17 = vector.broadcast %cst_6 : f32 to vector<32x128xf32>
    %18 = arith.select %5, %16, %17 : vector<32x128xi1>, vector<32x128xf32>
    %cst_7 = arith.constant dense<0xFF800000> : vector<32xf32>
    %19 = vector.multi_reduction <maximumf>, %18, %cst_7 [1] : vector<32x128xf32> to vector<32xf32>
    %20 = vector.shape_cast %19 : vector<32xf32> to vector<32x1xf32>
    %cst_8 = arith.constant 0xFF800000 : f32
    %21 = vector.broadcast %cst_8 : f32 to vector<32x1xf32>
    %22 = arith.cmpf oeq, %20, %21 : vector<32x1xf32>
    %cst_9 = arith.constant 0.000000e+00 : f32
    %23 = vector.broadcast %cst_9 : f32 to vector<32x1xf32>
    %24 = arith.select %22, %23, %20 : vector<32x1xi1>, vector<32x1xf32>
    %25 = vector.broadcast %24 : vector<32x1xf32> to vector<32x128xf32>
    %26 = arith.subf %18, %25 : vector<32x128xf32>
    %27 = math.exp %26 : vector<32x128xf32>
    %cst_10 = arith.constant dense<0.000000e+00> : vector<32xf32>
    %28 = vector.multi_reduction <add>, %27, %cst_10 [1] : vector<32x128xf32> to vector<32xf32>
    %29 = vector.shape_cast %28 : vector<32xf32> to vector<32x1xf32>
    %30 = math.log %29 : vector<32x1xf32>
    %31 = arith.addf %24, %30 : vector<32x1xf32>
    %cst_11 = arith.constant 0xFF800000 : f32
    %32 = vector.broadcast %cst_11 : f32 to vector<32x1xf32>
    %33 = arith.cmpf oeq, %20, %32 : vector<32x1xf32>
    %cst_12 = arith.constant 0.000000e+00 : f32
    %34 = vector.broadcast %cst_12 : f32 to vector<32x1xf32>
    %35 = arith.select %33, %34, %31 : vector<32x1xi1>, vector<32x1xf32>
    %cst_13 = arith.constant 0xFF800000 : f32
    %36 = vector.broadcast %cst_13 : f32 to vector<32x128xf32>
    %37 = arith.select %7, %1, %36 : vector<32x128xi1>, vector<32x128xf32>
    %cst_14 = arith.constant dense<0xFF800000> : vector<32xf32>
    %38 = vector.multi_reduction <maximumf>, %37, %cst_14 [1] : vector<32x128xf32> to vector<32xf32>
    %39 = vector.shape_cast %38 : vector<32xf32> to vector<32x1xf32>
    %cst_15 = arith.constant 2.000000e-01 : f32
    %40 = vector.broadcast %cst_15 : f32 to vector<32x1xf32>
    %41 = arith.maximumf %39, %40 : vector<32x1xf32>
    %cst_16 = arith.constant 2.000000e-01 : f32
    %42 = vector.broadcast %cst_16 : f32 to vector<32x1xf32>
    %43 = arith.subf %41, %42 : vector<32x1xf32>
    %cst_17 = arith.constant 2.000000e-01 : f32
    %44 = vector.broadcast %cst_17 : f32 to vector<32x1xf32>
    %45 = arith.subf %41, %44 : vector<32x1xf32>
    %46 = arith.mulf %43, %45 : vector<32x1xf32>
    %cst_18 = arith.constant 6.400000e+01 : f32
    %47 = vector.broadcast %cst_18 : f32 to vector<32x1xf32>
    %48 = arith.mulf %46, %47 : vector<32x1xf32>
    %cst_19 = arith.constant 2.000000e-01 : f32
    %49 = vector.broadcast %cst_19 : f32 to vector<32x128xf32>
    %50 = arith.subf %1, %49 : vector<32x128xf32>
    %cst_20 = arith.constant 0.000000e+00 : f32
    %51 = vector.broadcast %cst_20 : f32 to vector<32x128xf32>
    %52 = arith.maximumf %50, %51 : vector<32x128xf32>
    %cst_21 = arith.constant 2.000000e-01 : f32
    %53 = vector.broadcast %cst_21 : f32 to vector<32x128xf32>
    %54 = arith.subf %1, %53 : vector<32x128xf32>
    %55 = arith.mulf %52, %54 : vector<32x128xf32>
    %cst_22 = arith.constant 6.400000e+01 : f32
    %56 = vector.broadcast %cst_22 : f32 to vector<32x128xf32>
    %57 = arith.mulf %55, %56 : vector<32x128xf32>
    %cst_23 = arith.constant 0xFF800000 : f32
    %58 = vector.broadcast %cst_23 : f32 to vector<32x128xf32>
    %59 = arith.select %7, %57, %58 : vector<32x128xi1>, vector<32x128xf32>
    %60 = vector.broadcast %48 : vector<32x1xf32> to vector<32x128xf32>
    %61 = arith.subf %59, %60 : vector<32x128xf32>
    %62 = math.exp %61 : vector<32x128xf32>
    %cst_24 = arith.constant dense<0.000000e+00> : vector<32xf32>
    %63 = vector.multi_reduction <add>, %62, %cst_24 [1] : vector<32x128xf32> to vector<32xf32>
    %64 = vector.shape_cast %63 : vector<32xf32> to vector<32x1xf32>
    %65 = math.log %64 : vector<32x1xf32>
    %66 = arith.addf %48, %65 : vector<32x1xf32>
    %67 = arith.extui %7 : vector<32x128xi1> to vector<32x128xi32>
    %68 = arith.sitofp %67 : vector<32x128xi32> to vector<32x128xf32>
    %cst_25 = arith.constant dense<0.000000e+00> : vector<32xf32>
    %69 = vector.multi_reduction <add>, %68, %cst_25 [1] : vector<32x128xf32> to vector<32xf32>
    %70 = vector.shape_cast %69 : vector<32xf32> to vector<32x1xf32>
    %c0_26 = arith.constant 0 : index
    %c0_27 = arith.constant 0 : index
    %71 = vector.load %arg4[%c0_26, %c0_27] : memref<32x1xf32, #tpu.memory_space<vmem>>, vector<32x1xf32>
    tpu.vector_store %arg4[%c0_26, %c0_27], %66 {strides = array<i32>} : memref<32x1xf32, #tpu.memory_space<vmem>>, vector<32x1xf32>,
    %cst_28 = arith.constant 2.000000e+01 : f32
    %72 = vector.broadcast %cst_28 : f32 to vector<32x1xf32>
    %73 = arith.cmpf ogt, %70, %72 : vector<32x1xf32>
    %cst_29 = arith.constant 1.000000e+00 : f32
    %cst_30 = arith.constant 0.000000e+00 : f32
    %74 = vector.broadcast %cst_29 : f32 to vector<32x1xf32>
    %75 = vector.broadcast %cst_30 : f32 to vector<32x1xf32>
    %76 = arith.select %73, %74, %75 : vector<32x1xi1>, vector<32x1xf32>
    %77 = vector.shape_cast %76 : vector<32x1xf32> to vector<1x32x1xf32>
    %cst_31 = arith.constant dense<0xFF800000> : vector<1xf32>
    %78 = vector.multi_reduction <maximumf>, %77, %cst_31 [1, 2] : vector<1x32x1xf32> to vector<1xf32>
    %79 = vector.shape_cast %78 : vector<1xf32> to vector<1x1x1xf32>
    %80 = vector.extract %79[0, 0, 0] : f32 from vector<1x1x1xf32>
    %cst_32 = arith.constant 0.000000e+00 : f32
    %81 = arith.cmpf ogt, %80, %cst_32 : f32
    %82 = arith.extui %81 : i1 to i32
    %cst_33 = arith.constant 0xFF800000 : f32
    %c0_i32 = arith.constant 0 : i32
    %83 = arith.cmpi ne, %82, %c0_i32 : i32
    scf.if %83 {
      %99 = vector.broadcast %39 : vector<32x1xf32> to vector<32x128xf32>
      %100 = arith.cmpf oeq, %37, %99 : vector<32x128xf32>
      %101 = arith.extui %100 : vector<32x128xi1> to vector<32x128xi32>
      %102 = arith.sitofp %101 : vector<32x128xi32> to vector<32x128xf32>
      %cst_42 = arith.constant dense<0.000000e+00> : vector<32xf32>
      %103 = vector.multi_reduction <add>, %102, %cst_42 [1] : vector<32x128xf32> to vector<32xf32>
      %104 = vector.shape_cast %103 : vector<32xf32> to vector<32x1xf32>
      %cst_43 = arith.constant 1.000000e+01 : f32
      %105 = vector.broadcast %cst_43 : f32 to vector<32x1xf32>
      %106 = arith.minimumf %104, %105 : vector<32x1xf32>
      %107 = vector.broadcast %cst_33 : f32 to vector<32x128xf32>
      %108 = arith.select %100, %107, %37 : vector<32x128xi1>, vector<32x128xf32>
      %c0_i32_44 = arith.constant 0 : i32
      %cst_45 = arith.constant dense<0xFF800000> : vector<32xf32>
      %109 = vector.multi_reduction <maximumf>, %108, %cst_45 [1] : vector<32x128xf32> to vector<32xf32>
      %110 = vector.shape_cast %109 : vector<32xf32> to vector<32x1xf32>
      %111 = vector.broadcast %110 : vector<32x1xf32> to vector<32x128xf32>
      %112 = arith.cmpf oeq, %108, %111 : vector<32x128xf32>
      %113 = arith.extui %112 : vector<32x128xi1> to vector<32x128xi32>
      %114 = arith.sitofp %113 : vector<32x128xi32> to vector<32x128xf32>
      %cst_46 = arith.constant dense<0.000000e+00> : vector<32xf32>
      %115 = vector.multi_reduction <add>, %114, %cst_46 [1] : vector<32x128xf32> to vector<32xf32>
      %116 = vector.shape_cast %115 : vector<32xf32> to vector<32x1xf32>
      %cst_47 = arith.constant 1.000000e+01 : f32
      %117 = vector.broadcast %cst_47 : f32 to vector<32x1xf32>
      %118 = arith.subf %117, %106 : vector<32x1xf32>
      %cst_48 = arith.constant 0.000000e+00 : f32
      %119 = vector.broadcast %cst_48 : f32 to vector<32x1xf32>
      %120 = arith.maximumf %118, %119 : vector<32x1xf32>
      %121 = arith.minimumf %116, %120 : vector<32x1xf32>
      %cst_49 = arith.constant 2.000000e-01 : f32
      %122 = vector.broadcast %cst_49 : f32 to vector<32x1xf32>
      %123 = arith.maximumf %110, %122 : vector<32x1xf32>
      %cst_50 = arith.constant 2.000000e-01 : f32
      %124 = vector.broadcast %cst_50 : f32 to vector<32x1xf32>
      %125 = arith.subf %123, %124 : vector<32x1xf32>
      %cst_51 = arith.constant 2.000000e-01 : f32
      %126 = vector.broadcast %cst_51 : f32 to vector<32x1xf32>
      %127 = arith.subf %123, %126 : vector<32x1xf32>
      %128 = arith.mulf %125, %127 : vector<32x1xf32>
      %cst_52 = arith.constant 6.400000e+01 : f32
      %129 = vector.broadcast %cst_52 : f32 to vector<32x1xf32>
      %130 = arith.mulf %128, %129 : vector<32x1xf32>
      %131 = arith.subf %130, %48 : vector<32x1xf32>
      %132 = math.exp %131 : vector<32x1xf32>
      %133 = arith.mulf %121, %132 : vector<32x1xf32>
      %134 = arith.addf %106, %133 : vector<32x1xf32>
      %135 = arith.addf %106, %121 : vector<32x1xf32>
      %136 = vector.broadcast %cst_33 : f32 to vector<32x128xf32>
      %137 = arith.select %112, %136, %108 : vector<32x128xi1>, vector<32x128xf32>
      %c1_i32_53 = arith.constant 1 : i32
      %cst_54 = arith.constant dense<0xFF800000> : vector<32xf32>
      %138 = vector.multi_reduction <maximumf>, %137, %cst_54 [1] : vector<32x128xf32> to vector<32xf32>
      %139 = vector.shape_cast %138 : vector<32xf32> to vector<32x1xf32>
      %140 = vector.broadcast %139 : vector<32x1xf32> to vector<32x128xf32>
      %141 = arith.cmpf oeq, %137, %140 : vector<32x128xf32>
      %142 = arith.extui %141 : vector<32x128xi1> to vector<32x128xi32>
      %143 = arith.sitofp %142 : vector<32x128xi32> to vector<32x128xf32>
      %cst_55 = arith.constant dense<0.000000e+00> : vector<32xf32>
      %144 = vector.multi_reduction <add>, %143, %cst_55 [1] : vector<32x128xf32> to vector<32xf32>
      %145 = vector.shape_cast %144 : vector<32xf32> to vector<32x1xf32>
      %cst_56 = arith.constant 1.000000e+01 : f32
      %146 = vector.broadcast %cst_56 : f32 to vector<32x1xf32>
      %147 = arith.subf %146, %135 : vector<32x1xf32>
      %cst_57 = arith.constant 0.000000e+00 : f32
      %148 = vector.broadcast %cst_57 : f32 to vector<32x1xf32>
      %149 = arith.maximumf %147, %148 : vector<32x1xf32>
      %150 = arith.minimumf %145, %149 : vector<32x1xf32>
      %cst_58 = arith.constant 2.000000e-01 : f32
      %151 = vector.broadcast %cst_58 : f32 to vector<32x1xf32>
      %152 = arith.maximumf %139, %151 : vector<32x1xf32>
      %cst_59 = arith.constant 2.000000e-01 : f32
      %153 = vector.broadcast %cst_59 : f32 to vector<32x1xf32>
      %154 = arith.subf %152, %153 : vector<32x1xf32>
      %cst_60 = arith.constant 2.000000e-01 : f32
      %155 = vector.broadcast %cst_60 : f32 to vector<32x1xf32>
      %156 = arith.subf %152, %155 : vector<32x1xf32>
      %157 = arith.mulf %154, %156 : vector<32x1xf32>
      %cst_61 = arith.constant 6.400000e+01 : f32
      %158 = vector.broadcast %cst_61 : f32 to vector<32x1xf32>
      %159 = arith.mulf %157, %158 : vector<32x1xf32>
      %160 = arith.subf %159, %48 : vector<32x1xf32>
      %161 = math.exp %160 : vector<32x1xf32>
      %162 = arith.mulf %150, %161 : vector<32x1xf32>
      %163 = arith.addf %134, %162 : vector<32x1xf32>
      %164 = arith.addf %135, %150 : vector<32x1xf32>
      %165 = vector.broadcast %cst_33 : f32 to vector<32x128xf32>
      %166 = arith.select %141, %165, %137 : vector<32x128xi1>, vector<32x128xf32>
      %c2_i32_62 = arith.constant 2 : i32
      %cst_63 = arith.constant dense<0xFF800000> : vector<32xf32>
      %167 = vector.multi_reduction <maximumf>, %166, %cst_63 [1] : vector<32x128xf32> to vector<32xf32>
      %168 = vector.shape_cast %167 : vector<32xf32> to vector<32x1xf32>
      %169 = vector.broadcast %168 : vector<32x1xf32> to vector<32x128xf32>
      %170 = arith.cmpf oeq, %166, %169 : vector<32x128xf32>
      %171 = arith.extui %170 : vector<32x128xi1> to vector<32x128xi32>
      %172 = arith.sitofp %171 : vector<32x128xi32> to vector<32x128xf32>
      %cst_64 = arith.constant dense<0.000000e+00> : vector<32xf32>
      %173 = vector.multi_reduction <add>, %172, %cst_64 [1] : vector<32x128xf32> to vector<32xf32>
      %174 = vector.shape_cast %173 : vector<32xf32> to vector<32x1xf32>
      %cst_65 = arith.constant 1.000000e+01 : f32
      %175 = vector.broadcast %cst_65 : f32 to vector<32x1xf32>
      %176 = arith.subf %175, %164 : vector<32x1xf32>
      %cst_66 = arith.constant 0.000000e+00 : f32
      %177 = vector.broadcast %cst_66 : f32 to vector<32x1xf32>
      %178 = arith.maximumf %176, %177 : vector<32x1xf32>
      %179 = arith.minimumf %174, %178 : vector<32x1xf32>
      %cst_67 = arith.constant 2.000000e-01 : f32
      %180 = vector.broadcast %cst_67 : f32 to vector<32x1xf32>
      %181 = arith.maximumf %168, %180 : vector<32x1xf32>
      %cst_68 = arith.constant 2.000000e-01 : f32
      %182 = vector.broadcast %cst_68 : f32 to vector<32x1xf32>
      %183 = arith.subf %181, %182 : vector<32x1xf32>
      %cst_69 = arith.constant 2.000000e-01 : f32
      %184 = vector.broadcast %cst_69 : f32 to vector<32x1xf32>
      %185 = arith.subf %181, %184 : vector<32x1xf32>
      %186 = arith.mulf %183, %185 : vector<32x1xf32>
      %cst_70 = arith.constant 6.400000e+01 : f32
      %187 = vector.broadcast %cst_70 : f32 to vector<32x1xf32>
      %188 = arith.mulf %186, %187 : vector<32x1xf32>
      %189 = arith.subf %188, %48 : vector<32x1xf32>
      %190 = math.exp %189 : vector<32x1xf32>
      %191 = arith.mulf %179, %190 : vector<32x1xf32>
      %192 = arith.addf %163, %191 : vector<32x1xf32>
      %193 = arith.addf %164, %179 : vector<32x1xf32>
      %194 = vector.broadcast %cst_33 : f32 to vector<32x128xf32>
      %195 = arith.select %170, %194, %166 : vector<32x128xi1>, vector<32x128xf32>
      %c3_i32 = arith.constant 3 : i32
      %cst_71 = arith.constant dense<0xFF800000> : vector<32xf32>
      %196 = vector.multi_reduction <maximumf>, %195, %cst_71 [1] : vector<32x128xf32> to vector<32xf32>
      %197 = vector.shape_cast %196 : vector<32xf32> to vector<32x1xf32>
      %198 = vector.broadcast %197 : vector<32x1xf32> to vector<32x128xf32>
      %199 = arith.cmpf oeq, %195, %198 : vector<32x128xf32>
      %200 = arith.extui %199 : vector<32x128xi1> to vector<32x128xi32>
      %201 = arith.sitofp %200 : vector<32x128xi32> to vector<32x128xf32>
      %cst_72 = arith.constant dense<0.000000e+00> : vector<32xf32>
      %202 = vector.multi_reduction <add>, %201, %cst_72 [1] : vector<32x128xf32> to vector<32xf32>
      %203 = vector.shape_cast %202 : vector<32xf32> to vector<32x1xf32>
      %cst_73 = arith.constant 1.000000e+01 : f32
      %204 = vector.broadcast %cst_73 : f32 to vector<32x1xf32>
      %205 = arith.subf %204, %193 : vector<32x1xf32>
      %cst_74 = arith.constant 0.000000e+00 : f32
      %206 = vector.broadcast %cst_74 : f32 to vector<32x1xf32>
      %207 = arith.maximumf %205, %206 : vector<32x1xf32>
      %208 = arith.minimumf %203, %207 : vector<32x1xf32>
      %cst_75 = arith.constant 2.000000e-01 : f32
      %209 = vector.broadcast %cst_75 : f32 to vector<32x1xf32>
      %210 = arith.maximumf %197, %209 : vector<32x1xf32>
      %cst_76 = arith.constant 2.000000e-01 : f32
      %211 = vector.broadcast %cst_76 : f32 to vector<32x1xf32>
      %212 = arith.subf %210, %211 : vector<32x1xf32>
      %cst_77 = arith.constant 2.000000e-01 : f32
      %213 = vector.broadcast %cst_77 : f32 to vector<32x1xf32>
      %214 = arith.subf %210, %213 : vector<32x1xf32>
      %215 = arith.mulf %212, %214 : vector<32x1xf32>
      %cst_78 = arith.constant 6.400000e+01 : f32
      %216 = vector.broadcast %cst_78 : f32 to vector<32x1xf32>
      %217 = arith.mulf %215, %216 : vector<32x1xf32>
      %218 = arith.subf %217, %48 : vector<32x1xf32>
      %219 = math.exp %218 : vector<32x1xf32>
      %220 = arith.mulf %208, %219 : vector<32x1xf32>
      %221 = arith.addf %192, %220 : vector<32x1xf32>
      %222 = arith.addf %193, %208 : vector<32x1xf32>
      %223 = vector.broadcast %cst_33 : f32 to vector<32x128xf32>
      %224 = arith.select %199, %223, %195 : vector<32x128xi1>, vector<32x128xf32>
      %c4_i32 = arith.constant 4 : i32
      %cst_79 = arith.constant dense<0xFF800000> : vector<32xf32>
      %225 = vector.multi_reduction <maximumf>, %224, %cst_79 [1] : vector<32x128xf32> to vector<32xf32>
      %226 = vector.shape_cast %225 : vector<32xf32> to vector<32x1xf32>
      %227 = vector.broadcast %226 : vector<32x1xf32> to vector<32x128xf32>
      %228 = arith.cmpf oeq, %224, %227 : vector<32x128xf32>
      %229 = arith.extui %228 : vector<32x128xi1> to vector<32x128xi32>
      %230 = arith.sitofp %229 : vector<32x128xi32> to vector<32x128xf32>
      %cst_80 = arith.constant dense<0.000000e+00> : vector<32xf32>
      %231 = vector.multi_reduction <add>, %230, %cst_80 [1] : vector<32x128xf32> to vector<32xf32>
      %232 = vector.shape_cast %231 : vector<32xf32> to vector<32x1xf32>
      %cst_81 = arith.constant 1.000000e+01 : f32
      %233 = vector.broadcast %cst_81 : f32 to vector<32x1xf32>
      %234 = arith.subf %233, %222 : vector<32x1xf32>
      %cst_82 = arith.constant 0.000000e+00 : f32
      %235 = vector.broadcast %cst_82 : f32 to vector<32x1xf32>
      %236 = arith.maximumf %234, %235 : vector<32x1xf32>
      %237 = arith.minimumf %232, %236 : vector<32x1xf32>
      %cst_83 = arith.constant 2.000000e-01 : f32
      %238 = vector.broadcast %cst_83 : f32 to vector<32x1xf32>
      %239 = arith.maximumf %226, %238 : vector<32x1xf32>
      %cst_84 = arith.constant 2.000000e-01 : f32
      %240 = vector.broadcast %cst_84 : f32 to vector<32x1xf32>
      %241 = arith.subf %239, %240 : vector<32x1xf32>
      %cst_85 = arith.constant 2.000000e-01 : f32
      %242 = vector.broadcast %cst_85 : f32 to vector<32x1xf32>
      %243 = arith.subf %239, %242 : vector<32x1xf32>
      %244 = arith.mulf %241, %243 : vector<32x1xf32>
      %cst_86 = arith.constant 6.400000e+01 : f32
      %245 = vector.broadcast %cst_86 : f32 to vector<32x1xf32>
      %246 = arith.mulf %244, %245 : vector<32x1xf32>
      %247 = arith.subf %246, %48 : vector<32x1xf32>
      %248 = math.exp %247 : vector<32x1xf32>
      %249 = arith.mulf %237, %248 : vector<32x1xf32>
      %250 = arith.addf %221, %249 : vector<32x1xf32>
      %251 = arith.addf %222, %237 : vector<32x1xf32>
      %252 = vector.broadcast %cst_33 : f32 to vector<32x128xf32>
      %253 = arith.select %228, %252, %224 : vector<32x128xi1>, vector<32x128xf32>
      %c5_i32 = arith.constant 5 : i32
      %cst_87 = arith.constant dense<0xFF800000> : vector<32xf32>
      %254 = vector.multi_reduction <maximumf>, %253, %cst_87 [1] : vector<32x128xf32> to vector<32xf32>
      %255 = vector.shape_cast %254 : vector<32xf32> to vector<32x1xf32>
      %256 = vector.broadcast %255 : vector<32x1xf32> to vector<32x128xf32>
      %257 = arith.cmpf oeq, %253, %256 : vector<32x128xf32>
      %258 = arith.extui %257 : vector<32x128xi1> to vector<32x128xi32>
      %259 = arith.sitofp %258 : vector<32x128xi32> to vector<32x128xf32>
      %cst_88 = arith.constant dense<0.000000e+00> : vector<32xf32>
      %260 = vector.multi_reduction <add>, %259, %cst_88 [1] : vector<32x128xf32> to vector<32xf32>
      %261 = vector.shape_cast %260 : vector<32xf32> to vector<32x1xf32>
      %cst_89 = arith.constant 1.000000e+01 : f32
      %262 = vector.broadcast %cst_89 : f32 to vector<32x1xf32>
      %263 = arith.subf %262, %251 : vector<32x1xf32>
      %cst_90 = arith.constant 0.000000e+00 : f32
      %264 = vector.broadcast %cst_90 : f32 to vector<32x1xf32>
      %265 = arith.maximumf %263, %264 : vector<32x1xf32>
      %266 = arith.minimumf %261, %265 : vector<32x1xf32>
      %cst_91 = arith.constant 2.000000e-01 : f32
      %267 = vector.broadcast %cst_91 : f32 to vector<32x1xf32>
      %268 = arith.maximumf %255, %267 : vector<32x1xf32>
      %cst_92 = arith.constant 2.000000e-01 : f32
      %269 = vector.broadcast %cst_92 : f32 to vector<32x1xf32>
      %270 = arith.subf %268, %269 : vector<32x1xf32>
      %cst_93 = arith.constant 2.000000e-01 : f32
      %271 = vector.broadcast %cst_93 : f32 to vector<32x1xf32>
      %272 = arith.subf %268, %271 : vector<32x1xf32>
      %273 = arith.mulf %270, %272 : vector<32x1xf32>
      %cst_94 = arith.constant 6.400000e+01 : f32
      %274 = vector.broadcast %cst_94 : f32 to vector<32x1xf32>
      %275 = arith.mulf %273, %274 : vector<32x1xf32>
      %276 = arith.subf %275, %48 : vector<32x1xf32>
      %277 = math.exp %276 : vector<32x1xf32>
      %278 = arith.mulf %266, %277 : vector<32x1xf32>
      %279 = arith.addf %250, %278 : vector<32x1xf32>
      %280 = arith.addf %251, %266 : vector<32x1xf32>
      %281 = vector.broadcast %cst_33 : f32 to vector<32x128xf32>
      %282 = arith.select %257, %281, %253 : vector<32x128xi1>, vector<32x128xf32>
      %c6_i32 = arith.constant 6 : i32
      %cst_95 = arith.constant dense<0xFF800000> : vector<32xf32>
      %283 = vector.multi_reduction <maximumf>, %282, %cst_95 [1] : vector<32x128xf32> to vector<32xf32>
      %284 = vector.shape_cast %283 : vector<32xf32> to vector<32x1xf32>
      %285 = vector.broadcast %284 : vector<32x1xf32> to vector<32x128xf32>
      %286 = arith.cmpf oeq, %282, %285 : vector<32x128xf32>
      %287 = arith.extui %286 : vector<32x128xi1> to vector<32x128xi32>
      %288 = arith.sitofp %287 : vector<32x128xi32> to vector<32x128xf32>
      %cst_96 = arith.constant dense<0.000000e+00> : vector<32xf32>
      %289 = vector.multi_reduction <add>, %288, %cst_96 [1] : vector<32x128xf32> to vector<32xf32>
      %290 = vector.shape_cast %289 : vector<32xf32> to vector<32x1xf32>
      %cst_97 = arith.constant 1.000000e+01 : f32
      %291 = vector.broadcast %cst_97 : f32 to vector<32x1xf32>
      %292 = arith.subf %291, %280 : vector<32x1xf32>
      %cst_98 = arith.constant 0.000000e+00 : f32
      %293 = vector.broadcast %cst_98 : f32 to vector<32x1xf32>
      %294 = arith.maximumf %292, %293 : vector<32x1xf32>
      %295 = arith.minimumf %290, %294 : vector<32x1xf32>
      %cst_99 = arith.constant 2.000000e-01 : f32
      %296 = vector.broadcast %cst_99 : f32 to vector<32x1xf32>
      %297 = arith.maximumf %284, %296 : vector<32x1xf32>
      %cst_100 = arith.constant 2.000000e-01 : f32
      %298 = vector.broadcast %cst_100 : f32 to vector<32x1xf32>
      %299 = arith.subf %297, %298 : vector<32x1xf32>
      %cst_101 = arith.constant 2.000000e-01 : f32
      %300 = vector.broadcast %cst_101 : f32 to vector<32x1xf32>
      %301 = arith.subf %297, %300 : vector<32x1xf32>
      %302 = arith.mulf %299, %301 : vector<32x1xf32>
      %cst_102 = arith.constant 6.400000e+01 : f32
      %303 = vector.broadcast %cst_102 : f32 to vector<32x1xf32>
      %304 = arith.mulf %302, %303 : vector<32x1xf32>
      %305 = arith.subf %304, %48 : vector<32x1xf32>
      %306 = math.exp %305 : vector<32x1xf32>
      %307 = arith.mulf %295, %306 : vector<32x1xf32>
      %308 = arith.addf %279, %307 : vector<32x1xf32>
      %309 = arith.addf %280, %295 : vector<32x1xf32>
      %310 = vector.broadcast %cst_33 : f32 to vector<32x128xf32>
      %311 = arith.select %286, %310, %282 : vector<32x128xi1>, vector<32x128xf32>
      %c7_i32 = arith.constant 7 : i32
      %cst_103 = arith.constant dense<0xFF800000> : vector<32xf32>
      %312 = vector.multi_reduction <maximumf>, %311, %cst_103 [1] : vector<32x128xf32> to vector<32xf32>
      %313 = vector.shape_cast %312 : vector<32xf32> to vector<32x1xf32>
      %314 = vector.broadcast %313 : vector<32x1xf32> to vector<32x128xf32>
      %315 = arith.cmpf oeq, %311, %314 : vector<32x128xf32>
      %316 = arith.extui %315 : vector<32x128xi1> to vector<32x128xi32>
      %317 = arith.sitofp %316 : vector<32x128xi32> to vector<32x128xf32>
      %cst_104 = arith.constant dense<0.000000e+00> : vector<32xf32>
      %318 = vector.multi_reduction <add>, %317, %cst_104 [1] : vector<32x128xf32> to vector<32xf32>
      %319 = vector.shape_cast %318 : vector<32xf32> to vector<32x1xf32>
      %cst_105 = arith.constant 1.000000e+01 : f32
      %320 = vector.broadcast %cst_105 : f32 to vector<32x1xf32>
      %321 = arith.subf %320, %309 : vector<32x1xf32>
      %cst_106 = arith.constant 0.000000e+00 : f32
      %322 = vector.broadcast %cst_106 : f32 to vector<32x1xf32>
      %323 = arith.maximumf %321, %322 : vector<32x1xf32>
      %324 = arith.minimumf %319, %323 : vector<32x1xf32>
      %cst_107 = arith.constant 2.000000e-01 : f32
      %325 = vector.broadcast %cst_107 : f32 to vector<32x1xf32>
      %326 = arith.maximumf %313, %325 : vector<32x1xf32>
      %cst_108 = arith.constant 2.000000e-01 : f32
      %327 = vector.broadcast %cst_108 : f32 to vector<32x1xf32>
      %328 = arith.subf %326, %327 : vector<32x1xf32>
      %cst_109 = arith.constant 2.000000e-01 : f32
      %329 = vector.broadcast %cst_109 : f32 to vector<32x1xf32>
      %330 = arith.subf %326, %329 : vector<32x1xf32>
      %331 = arith.mulf %328, %330 : vector<32x1xf32>
      %cst_110 = arith.constant 6.400000e+01 : f32
      %332 = vector.broadcast %cst_110 : f32 to vector<32x1xf32>
      %333 = arith.mulf %331, %332 : vector<32x1xf32>
      %334 = arith.subf %333, %48 : vector<32x1xf32>
      %335 = math.exp %334 : vector<32x1xf32>
      %336 = arith.mulf %324, %335 : vector<32x1xf32>
      %337 = arith.addf %308, %336 : vector<32x1xf32>
      %338 = arith.addf %309, %324 : vector<32x1xf32>
      %339 = vector.broadcast %cst_33 : f32 to vector<32x128xf32>
      %340 = arith.select %315, %339, %311 : vector<32x128xi1>, vector<32x128xf32>
      %c8_i32 = arith.constant 8 : i32
      %cst_111 = arith.constant dense<0xFF800000> : vector<32xf32>
      %341 = vector.multi_reduction <maximumf>, %340, %cst_111 [1] : vector<32x128xf32> to vector<32xf32>
      %342 = vector.shape_cast %341 : vector<32xf32> to vector<32x1xf32>
      %343 = vector.broadcast %342 : vector<32x1xf32> to vector<32x128xf32>
      %344 = arith.cmpf oeq, %340, %343 : vector<32x128xf32>
      %345 = arith.extui %344 : vector<32x128xi1> to vector<32x128xi32>
      %346 = arith.sitofp %345 : vector<32x128xi32> to vector<32x128xf32>
      %cst_112 = arith.constant dense<0.000000e+00> : vector<32xf32>
      %347 = vector.multi_reduction <add>, %346, %cst_112 [1] : vector<32x128xf32> to vector<32xf32>
      %348 = vector.shape_cast %347 : vector<32xf32> to vector<32x1xf32>
      %cst_113 = arith.constant 1.000000e+01 : f32
      %349 = vector.broadcast %cst_113 : f32 to vector<32x1xf32>
      %350 = arith.subf %349, %338 : vector<32x1xf32>
      %cst_114 = arith.constant 0.000000e+00 : f32
      %351 = vector.broadcast %cst_114 : f32 to vector<32x1xf32>
      %352 = arith.maximumf %350, %351 : vector<32x1xf32>
      %353 = arith.minimumf %348, %352 : vector<32x1xf32>
      %cst_115 = arith.constant 2.000000e-01 : f32
      %354 = vector.broadcast %cst_115 : f32 to vector<32x1xf32>
      %355 = arith.maximumf %342, %354 : vector<32x1xf32>
      %cst_116 = arith.constant 2.000000e-01 : f32
      %356 = vector.broadcast %cst_116 : f32 to vector<32x1xf32>
      %357 = arith.subf %355, %356 : vector<32x1xf32>
      %cst_117 = arith.constant 2.000000e-01 : f32
      %358 = vector.broadcast %cst_117 : f32 to vector<32x1xf32>
      %359 = arith.subf %355, %358 : vector<32x1xf32>
      %360 = arith.mulf %357, %359 : vector<32x1xf32>
      %cst_118 = arith.constant 6.400000e+01 : f32
      %361 = vector.broadcast %cst_118 : f32 to vector<32x1xf32>
      %362 = arith.mulf %360, %361 : vector<32x1xf32>
      %363 = arith.subf %362, %48 : vector<32x1xf32>
      %364 = math.exp %363 : vector<32x1xf32>
      %365 = arith.mulf %353, %364 : vector<32x1xf32>
      %366 = arith.addf %337, %365 : vector<32x1xf32>
      %367 = arith.addf %338, %353 : vector<32x1xf32>
      %368 = vector.broadcast %cst_33 : f32 to vector<32x128xf32>
      %369 = arith.select %344, %368, %340 : vector<32x128xi1>, vector<32x128xf32>
      %370 = math.log %366 : vector<32x1xf32>
      %371 = arith.addf %48, %370 : vector<32x1xf32>
      %cst_119 = arith.constant 2.000000e+01 : f32
      %372 = vector.broadcast %cst_119 : f32 to vector<32x1xf32>
      %373 = arith.cmpf ogt, %70, %372 : vector<32x1xf32>
      %374 = arith.select %373, %371, %66 : vector<32x1xi1>, vector<32x1xf32>
      %c0_120 = arith.constant 0 : index
      %c0_121 = arith.constant 0 : index
      %375 = vector.load %arg4[%c0_120, %c0_121] : memref<32x1xf32, #tpu.memory_space<vmem>>, vector<32x1xf32>
      tpu.vector_store %arg4[%c0_120, %c0_121], %374 {strides = array<i32>} : memref<32x1xf32, #tpu.memory_space<vmem>>, vector<32x1xf32>,
    } else {
    }
    %c0_34 = arith.constant 0 : index
    %c0_35 = arith.constant 0 : index
    %84 = vector.load %arg4[%c0_34, %c0_35] : memref<32x1xf32, #tpu.memory_space<vmem>>, vector<32x1xf32>
    %85 = arith.addf %84, %35 : vector<32x1xf32>
    %cst_36 = arith.constant 0.000000e+00 : f32
    %86 = vector.broadcast %cst_36 : f32 to vector<32x1xf32>
    %87 = arith.maximumf %85, %86 : vector<32x1xf32>
    %88 = math.absf %85 : vector<32x1xf32>
    %cst_37 = arith.constant 0.000000e+00 : f32
    %89 = vector.broadcast %cst_37 : f32 to vector<32x1xf32>
    %90 = arith.subf %89, %88 : vector<32x1xf32>
    %91 = math.exp %90 : vector<32x1xf32>
    %92 = math.log1p %91 : vector<32x1xf32>
    %93 = arith.addf %87, %92 : vector<32x1xf32>
    %cst_38 = arith.constant dense<0.000000e+00> : vector<1xf32>
    %94 = vector.multi_reduction <add>, %93, %cst_38 [0] : vector<32x1xf32> to vector<1xf32>
    %95 = vector.shape_cast %94 : vector<1xf32> to vector<1x1xf32>
    %c0_39 = arith.constant 0 : index
    %c0_40 = arith.constant 0 : index
    %c0_41 = arith.constant 0 : index
    %96 = vector.load %arg3[%c0_39, %c0_40, %c0_41] : memref<1x1x1xf32, #tpu.memory_space<vmem>>, vector<1x1x1xf32>
    %97 = vector.shape_cast %96 : vector<1x1x1xf32> to vector<1x1xf32>
    %98 = vector.shape_cast %95 : vector<1x1xf32> to vector<1x1x1xf32>
    tpu.vector_store %arg3[%c0_39, %c0_40, %c0_41], %98 {strides = array<i32>} : memref<1x1x1xf32, #tpu.memory_space<vmem>>, vector<1x1x1xf32>,
    return
  }
  func.func @transform_0(%arg0: i32) -> (i32, i32) {
    %c0_i32 = arith.constant 0 : i32
    %c0_i32_0 = arith.constant 0 : i32
    return %arg0, %c0_i32 : i32, i32
  }
  func.func @transform_1(%arg0: i32) -> (i32, i32) {
    %c0_i32 = arith.constant 0 : i32
    %c0_i32_0 = arith.constant 0 : i32
    return %arg0, %c0_i32 : i32, i32
  }
  func.func @transform_2(%arg0: i32) -> (i32, i32, i32) {
    %c0_i32 = arith.constant 0 : i32
    %c0_i32_0 = arith.constant 0 : i32
    %c0_i32_1 = arith.constant 0 : i32
    return %arg0, %c0_i32, %c0_i32_0 : i32, i32, i32
  }
}

</mosaic_0001>

<bundles_post_ra>
// kernel: tpu_custom_call.1
= control target key start
LH: loop header
LB: loop body
LE: loop exit
PB: predicated region body
PF: predicated region fallthrough
CT: control target
= control target key end

     0   :  { %7 = vsyncpa [#allocation4], 0  ;;  %s2505_s0 = inlined_call_operand.hbm [shape: bf16[32,128], index: 0, kind: input, shape index: {}]   ;;  %s2506_s1 = inlined_call_operand.hbm [shape: s8[32,128], index: 1, kind: input, shape index: {}]   ;;  %s2507_s2 = inlined_call_operand.hbm [shape: f32[1,1,1], index: 2, kind: output, shape index: {}]  }
   0x1   :  { %8 = vsyncpa [#allocation7], 0 }
   0x2   :  { %9 = vsyncpa [#allocation5], 0  ;;  %s1449_s9 = smov [#allocation3]  }
   0x3   :  { %s15_s10 = sshll.u32 %s1449_s9, 4  ;;  %s16_s10 = int_to_ptr.vmem [resolvable:$true] %s15_s10 }
   0x4   :  { %s1391_s11 = scalar_lea.vmem %s16_s10, 256  ;;  %p1396_p1 = scmp.lt.s32.totalorder %s16_s10, %s16_s10 }
   0x5   :  { %p1392_p0 = scmp.ne.s32.totalorder %s16_s10, %s1391_s11  ;;  %p1397_p2 = scmp.lt.s32.totalorder %s1391_s11, %s1391_s11 }
   0x7   :  { %p1398_p3 = por %p1397_p2, %p1396_p1 }
   0x9   :  { %p1399_p4 = pnand %p1398_p3, %p1392_p0 }
   0xb   :  { %1402 = shalt.err (!%p1399_p4)
}
   0xc   :  { %s1450_s12 = smov 64   ;;  %s1451_s13 = smov 4  }
   0xd   :  { %21 = dma.hbm_to_vmem [thread:$0]  %s2505_s0, 256, %s16_s10, [#allocation4], %s1450_s12, %s1450_s12, %s1451_s13  }
   0xe   :  { %s1452_s16 = smov [#allocation6]  }
   0xf   :  { %s28_s17 = sshll.u32 %s1452_s16, 4  ;;  %s29_s17 = int_to_ptr.vmem [resolvable:$true] %s28_s17 }
  0x10   :  { %s1411_s18 = scalar_lea.vmem %s29_s17, 128  ;;  %p1416_p6 = scmp.lt.s32.totalorder %s29_s17, %s29_s17 }
  0x11   :  { %p1412_p5 = scmp.ne.s32.totalorder %s29_s17, %s1411_s18  ;;  %p1417_p7 = scmp.lt.s32.totalorder %s1411_s18, %s1411_s18 }
  0x13   :  { %p1418_p8 = por %p1417_p7, %p1416_p6 }
  0x15   :  { %p1419_p9 = pnand %p1418_p8, %p1412_p5 }
  0x17   :  { %1422 = shalt.err (!%p1419_p9)
}
  0x18   :  { %31 = dma.hbm_to_vmem [thread:$0]  %s2506_s1, 128, %s29_s17, [#allocation7]  }
  0x19   :  { %1443 = dma.done.wait [#allocation4], 256  }
  0x1a   :  { %1444 = vsyncadd [#allocation4], 4294967040 }
  0x1b   :  { %1445 = dma.done.wait [#allocation7], 128  }
  0x1c   :  { %1446 = vsyncadd [#allocation7], 4294967168  ;;  %v1238_v0 = vld [vmem:[#allocation3] sm:$0xff]   ;;  %v46_v1 = vld [vmem:[#allocation6] sm:$0xff]  ;;  %v1453_v50 = vmov 0.0  }
  0x1d   :  { %v1245_v2 = vld [vmem:[#allocation3 + $0x8] sm:$0xff]   ;;  %v1239_v3 = vunpack.c.l.bf16 %v1238_v0  ;;  %v47_v4 = vunpack.c.0.s8 %v46_v1  ;;  %v48_v5 = vunpack.c.1.s8 %v46_v1  ;;  %v1240_v6 = vunpack.c.h.bf16 %v1238_v0 }
  0x1e   :  { %v1243_v7 = vunpack.c.l.bf16 %v1245_v2  ;;  %v49_v8 = vunpack.c.2.s8 %v46_v1  ;;  %v50_v9 = vunpack.c.3.s8 %v46_v1  ;;  %v1244_v13 = vunpack.c.h.bf16 %v1245_v2 }
  0x1f   :  { %vm1477_vm0 = vcmp.eq.s32.totalorder %v47_v4, 2  ;;  %v1153_v11 = vadd.f32 -0.2, %v1239_v3  ;;  %vm1481_vm1 = vcmp.eq.s32.totalorder %v48_v5, 2  ;;  %v59_v20 = vsub.f32 0.8, %v1239_v3 }
  0x20   :  { %v1487_v14 = vsel %vm1477_vm0, %v1239_v3, -inf  ;;  %vm1489_vm2 = vcmp.eq.s32.totalorder %v49_v8, 2  ;;  %v1155_v16 = vadd.f32 -0.2, %v1243_v7  ;;  %vm1498_vm3 = vcmp.eq.s32.totalorder %v50_v9, 2 }
  0x21   :  { %v163_v17 = vmax.f32 %v1153_v11, 0.0  ;;  %135 = vmax.xlane.f32.xlu0 %v1487_v14  ;;  %v1496_v18 = vsel %vm1489_vm2, %v1243_v7, -inf  ;;  %v1504_v21 = vsel %vm1481_vm1, %v1240_v6, -inf  ;;  %v60_v23 = vsub.f32 0.8, %v1240_v6 }
  0x22   :  { %v165_v22 = vmax.f32 %v1155_v16, 0.0  ;;  %139 = vmax.xlane.f32.xlu1 %v1496_v18  ;;  %v1509_v25 = vsel %vm1498_vm3, %v1244_v13, -inf  ;;  %v63_v26 = vmax.f32 %v59_v20, 0.0  ;;  %v61_v27 = vsub.f32 0.8, %v1243_v7 }
  0x23   :  { %v167_v24 = vmul.f32 %v1153_v11, %v163_v17  ;;  %v64_v29 = vmax.f32 %v60_v23, 0.0  ;;  %v62_v30 = vsub.f32 0.8, %v1244_v13  ;;  %vm51_vm4 = vcmp.eq.s32.totalorder %v47_v4, 1 }
  0x24   :  { %v169_v28 = vmul.f32 %v1155_v16, %v165_v22  ;;  %v67_v32 = vmul.f32 %v63_v26, %v59_v20  ;;  %v65_v33 = vmax.f32 %v61_v27, 0.0  ;;  %vm52_vm5 = vcmp.eq.s32.totalorder %v48_v5, 1 }
  0x25   :  { %v171_v31 = vmul.f32 64.0, %v167_v24  ;;  %137 = vmax.xlane.f32.xlu0 %v1504_v21  ;;  %v68_v35 = vmul.f32 %v64_v29, %v60_v23  ;;  %v66_v36 = vmax.f32 %v62_v30, 0.0  ;;  %vm53_vm6 = vcmp.eq.s32.totalorder %v49_v8, 1 }
  0x26   :  { %v1512_v34 = vmul.f32 64.0, %v169_v28  ;;  %141 = vmax.xlane.f32.xlu1 %v1509_v25  ;;  %v71_v38 = vmul.f32 64.0, %v67_v32  ;;  %v69_v39 = vmul.f32 %v65_v33, %v61_v27  ;;  %vm54_vm7 = vcmp.eq.s32.totalorder %v50_v9, 1 }
  0x27   :  { %v175_v37 = vsel %vm1477_vm0, %v171_v31, -inf  ;;  %v72_v41 = vmul.f32 64.0, %v68_v35  ;;  %v70_v42 = vmul.f32 %v66_v36, %v62_v30  ;;  %v1154_v49 = vadd.f32 -0.2, %v1240_v6 }
  0x28   :  { %v177_v40 = vsel %vm1489_vm2, %v1512_v34, -inf  ;;  %v75_v43 = vsel %vm51_vm4, %v71_v38, -inf  ;;  %v73_v44 = vmul.f32 64.0, %v69_v39  ;;  %v1157_v51 = vsel %vm1477_vm0, 1.0, %v1453_v50 }
  0x29   :  { %79 = vmax.xlane.f32.xlu0 %v75_v43  ;;  %v76_v45 = vsel %vm52_vm5, %v72_v41, -inf  ;;  %v74_v46 = vmul.f32 64.0, %v70_v42  ;;  %v1158_v52 = vsel %vm1481_vm1, 1.0, %v1453_v50  ;;  %v164_v53 = vmax.f32 %v1154_v49, 0.0 }
  0x2a   :  { %81 = vmax.xlane.f32.xlu1 %v76_v45  ;;  %v1520_v47 = vsel %vm53_vm6, %v73_v44, -inf  ;;  %v1159_v55 = vsel %vm1489_vm2, 1.0, %v1453_v50  ;;  %v1160_v56 = vsel %vm1498_vm3, 1.0, %v1453_v50  ;;  %v1156_v58 = vadd.f32 -0.2, %v1244_v13 }
  0x2b   :  { %v1522_v48 = vsel %vm54_vm7, %v74_v46, -inf  ;;  %v168_v54 = vmul.f32 %v1154_v49, %v164_v53  ;;  %vm2511_vm0 = vcmask 7168  }
  0x2c   :  { %v166_v60 = vmax.f32 %v1156_v58, 0.0 }
  0x2d   :  { %83 = vmax.xlane.f32.xlu0 %v1520_v47  ;;  %v172_v57 = vmul.f32 64.0, %v168_v54 }
  0x2e   :  { %85 = vmax.xlane.f32.xlu1 %v1522_v48  ;;  %v170_v61 = vmul.f32 %v1156_v58, %v166_v60 }
  0x2f   :  { %v176_v59 = vsel %vm1481_vm1, %v172_v57, -inf }
  0x30   :  { %v174_v62 = vmul.f32 64.0, %v170_v61 }
  0x31   :  { %219 = vadd.xlane.f32.xlu0 %v1157_v51 }
  0x32   :  { %221 = vadd.xlane.f32.xlu1 %v1158_v52  ;;  %v178_v63 = vsel %vm1498_vm3, %v174_v62, -inf }
  0x35   :  { %223 = vadd.xlane.f32.xlu0 %v1159_v55 }
  0x36   :  { %225 = vadd.xlane.f32.xlu1 %v1160_v56 }
  0xaa   :  { %v1542_v0 = vpop.xlane.xlu0 %135 }
  0xab   :  { %v143_v1 = vmax.f32 %v1542_v0, 0.2  ;;  %v1545_v2 = vpop.xlane.xlu1 %139 }
  0xac   :  { %v145_v3 = vmax.f32 %v1545_v2, 0.2 }
  0xad   :  { %v1149_v4 = vadd.f32 -0.2, %v143_v1 }
  0xae   :  { %v1548_v5 = vpop.xlane.xlu0 %137  ;;  %v1151_v6 = vadd.f32 -0.2, %v145_v3 }
  0xaf   :  { %v151_v7 = vmul.f32 %v1149_v4, %v1149_v4  ;;  %v144_v8 = vmax.f32 %v1548_v5, 0.2  ;;  %v1551_v9 = vpop.xlane.xlu1 %141 }
  0xb0   :  { %v146_v10 = vmax.f32 %v1551_v9, 0.2  ;;  %v153_v13 = vmul.f32 %v1151_v6, %v1151_v6 }
  0xb1   :  { %v1554_v11 = vmul.f32 64.0, %v151_v7  ;;  %v1150_v12 = vadd.f32 -0.2, %v144_v8 }
  0xb2   :  { %v1152_v19 = vadd.f32 -0.2, %v146_v10  ;;  %v1557_v20 = vpop.xlane.xlu0 %79  ;;  %v1570_v27 = vmul.f32 64.0, %v153_v13 }
  0xb3   :  { %2570 = vst [vmem:[#allocation12_spill] sm:$0xff] %v1554_v11  ;;  %v179_v16 = vsub.f32 %v175_v37, %v1554_v11  ;;  %v152_v17 = vmul.f32 %v1150_v12, %v1150_v12  ;;  %vm87_vm8 = vcmp.eq.f32.partialorder %v1557_v20, -inf  ;;  %v1560_v22 = vpop.xlane.xlu1 %81 }
  0xb4   :  { %v1567_v26 = vsel %vm87_vm8, 0.0, %v1557_v20  ;;  %vm88_vm9 = vcmp.eq.f32.partialorder %v1560_v22, -inf  ;;  %2572 = vst [vmem:[#allocation14_spill] sm:$0xff] %v1570_v27  ;;  %v154_v31 = vmul.f32 %v1152_v19, %v1152_v19 }
  0xb5   :  { %v183_v23 = vmul.f32 1.442695, %v179_v16  ;;  %v1562_v24 = vmul.f32 64.0, %v152_v17  ;;  %v95_v28 = vsub.f32 %v75_v43, %v1567_v26  ;;  %v1576_v29 = vsel %vm88_vm9, 0.0, %v1560_v22 }
  0xb6   :  { %v96_v32 = vsub.f32 %v76_v45, %v1576_v29  ;;  %v1580_v33 = vpop.xlane.xlu0 %83  ;;  %v181_v43 = vsub.f32 %v177_v40, %v1570_v27  ;;  %v1603_v44 = vmul.f32 64.0, %v154_v31 }
  0xb7   :  { %2571 = vst [vmem:[#allocation13_spill] sm:$0xff] %v1562_v24  ;;  %1255 = vpow2.f32 %v183_v23  ;;  %v180_v30 = vsub.f32 %v176_v59, %v1562_v24  ;;  %v99_v35 = vmul.f32 1.442695, %v95_v28  ;;  %vm89_vm10 = vcmp.eq.f32.partialorder %v1580_v33, -inf  ;;  %v1583_v36 = vpop.xlane.xlu1 %85 }
  0xb8   :  { %v101_v38 = vmul.f32 1.442695, %v96_v32  ;;  %v1588_v39 = vsel %vm89_vm10, 0.0, %v1580_v33  ;;  %vm90_vm11 = vcmp.eq.f32.partialorder %v1583_v36, -inf  ;;  %2573 = vst [vmem:[#allocation15_spill] sm:$0xff] %v1603_v44 }
  0xb9   :  { %v185_v37 = vmul.f32 1.442695, %v180_v30  ;;  %1257 = vpow2.f32 %v99_v35  ;;  %v97_v41 = vsub.f32 %v1520_v47, %v1588_v39  ;;  %v1596_v42 = vsel %vm90_vm11, 0.0, %v1583_v36 }
  0xba   :  { %v98_v45 = vsub.f32 %v1522_v48, %v1596_v42  ;;  %v1607_v46 = vpop.xlane.xlu0 %219  ;;  %v187_v40 = vmul.f32 1.442695, %v181_v43  ;;  %v182_v48 = vsub.f32 %v178_v63, %v1603_v44 }
  0xbb   :  { %1259 = vpow2.f32 %v185_v37  ;;  %2574 = vst [vmem:[#allocation16_spill] sm:$0xff] %v1607_v46  ;;  %v103_v47 = vmul.f32 1.442695, %v97_v41  ;;  %v1609_v49 = vpop.xlane.xlu1 %221  ;;  %vm2512_vm12 = vcmp.gt.f32.partialorder %v1607_v46, 20.0 }
  0xbc   :  { %2575 = vst [vmem:[#allocation17_spill] sm:$0xff] %v1609_v49  ;;  %1261 = vpow2.f32 %v101_v38  ;;  %v105_v51 = vmul.f32 1.442695, %v98_v45  ;;  %vm2510_vm13 = vcmp.gt.f32.partialorder %v1609_v49, 20.0  ;;  %v236_v34 = vsel %vm2512_vm12, 1.0, %v1453_v50 }
  0xbd   :  { %1263 = vpow2.f32 %v103_v47  ;;  %v237_v15 = vsel %vm2510_vm13, 1.0, %v1453_v50  ;;  %v189_v57 = vmul.f32 1.442695, %v182_v48 }
  0xbe   :  { %v1620_v52 = vpop.xlane.xlu0 %223  ;;  %1265 = vpow2.f32 %v105_v51  ;;  %v240_v54 = vmax.f32 %v236_v34, %v237_v15 }
  0xbf   :  { %2576 = vst [vmem:[#allocation18_spill] sm:$0xff] %v1620_v52  ;;  %v1622_v53 = vpop.xlane.xlu1 %225  ;;  %vm2509_vm14 = vcmp.gt.f32.partialorder %v1620_v52, 20.0  ;;  %1267 = vpow2.f32 %v187_v40 }
  0xc0   :  { %2577 = vst [vmem:[#allocation19_spill] sm:$0xff] %v1622_v53  ;;  %vm2508_vm15 = vcmp.gt.f32.partialorder %v1622_v53, 20.0  ;;  %v238_v55 = vsel %vm2509_vm14, 1.0, %v1453_v50  ;;  %1269 = vpow2.f32 %v189_v57 }
  0xc1   :  { %v239_v56 = vsel %vm2508_vm15, 1.0, %v1453_v50 }
  0xc2   :  { %v241_v58 = vmax.f32 %v238_v55, %v239_v56 }
  0xc4   :  { %v1256_v59 = vpop.eup %1255  ;;  %v242_v60 = vmax.f32 %v240_v54, %v241_v58 }
  0xc5   :  { %191 = vadd.xlane.f32.xlu0 %v1256_v59 }
  0xc6   :  { %v1258_v61 = vpop.eup %1257  ;;  %v243_v62 = vrot.slane %v242_v60, 4 }
  0xc8   :  { %v1260_v63 = vpop.eup %1259  ;;  %v244_v1 = vmax.f32 %v242_v60, %v243_v62 }
  0xc9   :  { %193 = vadd.xlane.f32.xlu1 %v1260_v63  ;;  %107 = vadd.xlane.f32.xlu0 %v1258_v61  ;;  %v1262_v3 = vpop.eup %1261 }
  0xca   :  { %v1264_v4 = vpop.eup %1263  ;;  %v245_v6 = vrot.slane %v244_v1, 2 }
  0xcb   :  { %v1266_v50 = vpop.eup %1265 }
  0xcc   :  { %v246_v7 = vmax.f32 %v244_v1, %v245_v6  ;;  %v1268_v10 = vpop.eup %1267 }
  0xcd   :  { %109 = vadd.xlane.f32.xlu1 %v1262_v3  ;;  %111 = vadd.xlane.f32.xlu0 %v1264_v4  ;;  %v1270_v13 = vpop.eup %1269 }
  0xce   :  { %v247_v8 = vrot.slane %v246_v7, 1 }
  0xd0   :  { %v248_v12 = vmax.f32 %v246_v7, %v247_v8 }
  0xd1   :  { %113 = vadd.xlane.f32.xlu1 %v1266_v50  ;;  %195 = vadd.xlane.f32.xlu0 %v1268_v10 }
  0xd2   :  { %1246 = vpush %v248_v12 }
  0xd5   :  { %197 = vadd.xlane.f32.xlu1 %v1270_v13 }
 0x103   :  { %s1632_s0 = spop %1246 }
 0x104   :  { %p250_p10 = scmp.gt.f32.partialorder %s1632_s0, 0.0 }
 0x14e   :  { %v192_v16 = vpop.xlane.xlu0 %191 }
 0x14f   :  { %1271 = vlog2.f32 %v192_v16 }
 0x152   :  { %v194_v17 = vpop.xlane.xlu1 %193  ;;  %v108_v19 = vpop.xlane.xlu0 %107 }
 0x153   :  { %1273 = vlog2.f32 %v194_v17 }
 0x154   :  { %1275 = vlog2.f32 %v108_v19 }
 0x156   :  { %v110_v23 = vpop.xlane.xlu1 %109  ;;  %v112_v28 = vpop.xlane.xlu0 %111 }
 0x157   :  { %1277 = vlog2.f32 %v110_v23 }
 0x158   :  { %1279 = vlog2.f32 %v112_v28 }
 0x15a   :  { %v114_v30 = vpop.xlane.xlu1 %113  ;;  %v196_v31 = vpop.xlane.xlu0 %195 }
 0x15b   :  { %1281 = vlog2.f32 %v114_v30 }
 0x15c   :  { %v1272_v32 = vpop.eup %1271  ;;  %1283 = vlog2.f32 %v196_v31 }
 0x15d   :  { %v200_v35 = vmul.f32 0.6931472, %v1272_v32 }
 0x15e   :  { %v198_v37 = vpop.xlane.xlu1 %197 }
 0x15f   :  { %v1636_v38 = vadd.f32 %v200_v35, %v1554_v11  ;;  %1285 = vlog2.f32 %v198_v37 }
 0x160   :  { %v1274_v41 = vpop.eup %1273 }
 0x161   :  { %2578 = vst [vmem:[#allocation20_spill] sm:$0xff] %v1636_v38  ;;  %v1276_v43 = vpop.eup %1275  ;;  %228 = vst.msk [vmem:[#allocation2] sm:$0xff] %vm2511_vm0, %v1636_v38  ;;  %v202_v45 = vmul.f32 0.6931472, %v1274_v41 }
 0x162   :  { %v116_v47 = vmul.f32 0.6931472, %v1276_v43 }
 0x163   :  { %v1641_v51 = vadd.f32 %v202_v45, %v1562_v24 }
 0x164   :  { %v1278_v15 = vpop.eup %1277  ;;  %v123_v34 = vadd.f32 %v116_v47, %v1567_v26 }
 0x165   :  { %2579 = vst [vmem:[#allocation21_spill] sm:$0xff] %v1641_v51  ;;  %v1280_v40 = vpop.eup %1279  ;;  %229 = vst.msk [vmem:[#allocation2 + $0x8] sm:$0xff] %vm2511_vm0, %v1641_v51  ;;  %v118_v48 = vmul.f32 0.6931472, %v1278_v15 }
 0x166   :  { %v1648_v54 = vsel %vm87_vm8, 0.0, %v123_v34  ;;  %v120_v55 = vmul.f32 0.6931472, %v1280_v40 }
 0x167   :  { %2580 = vst [vmem:[#allocation22_spill] sm:$0xff] %v1648_v54  ;;  %v124_v56 = vadd.f32 %v118_v48, %v1576_v29 }
 0x168   :  { %v1282_v57 = vpop.eup %1281  ;;  %v125_v58 = vadd.f32 %v120_v55, %v1588_v39 }
 0x169   :  { %v1284_v59 = vpop.eup %1283  ;;  %v1654_v60 = vsel %vm88_vm9, 0.0, %v124_v56  ;;  %v122_v26 = vmul.f32 0.6931472, %v1282_v57 }
 0x16a   :  { %2581 = vst [vmem:[#allocation23_spill] sm:$0xff] %v1654_v60  ;;  %v1658_v61 = vsel %vm89_vm10, 0.0, %v125_v58  ;;  %v204_v62 = vmul.f32 0.6931472, %v1284_v59 }
 0x16b   :  { %2582 = vst [vmem:[#allocation24_spill] sm:$0xff] %v1658_v61  ;;  %v126_v20 = vadd.f32 %v122_v26, %v1596_v42 }
 0x16c   :  { %v1286_v63 = vpop.eup %1285  ;;  %v1662_v1 = vadd.f32 %v204_v62, %v1570_v27 }
 0x16d   :  { %v1666_v29 = vsel %vm90_vm11, 0.0, %v126_v20  ;;  %v206_v39 = vmul.f32 0.6931472, %v1286_v63  ;;  %253 = sbr.rel (!%p250_p10) target bundleno = 1804 (0x70c), region = 21 }
 0x16e   :  { %2583 = vst [vmem:[#allocation25_spill] sm:$0xff] %v1662_v1  ;;  %2584 = vst [vmem:[#allocation26_spill] sm:$0xff] %v1666_v29 }
 0x16f   :  { %230 = vst.msk [vmem:[#allocation2 + $0x10] sm:$0xff] %vm2511_vm0, %v1662_v1  ;;  %v1671_v22 = vadd.f32 %v206_v39, %v1603_v44 }
 0x171   :  { %2585 = vst [vmem:[#allocation27_spill] sm:$0xff] %v1671_v22  ;;  %231 = vst.msk [vmem:[#allocation2 + $0x18] sm:$0xff] %vm2511_vm0, %v1671_v22 }
 0x172   :  { %vm254_vm1 = vcmp.eq.f32.partialorder %v1487_v14, %v1542_v0  ;;  %vm256_vm2 = vcmp.eq.f32.partialorder %v1496_v18, %v1545_v2  ;;  %vm255_vm3 = vcmp.eq.f32.partialorder %v1504_v21, %v1548_v5  ;;  %vm257_vm4 = vcmp.eq.f32.partialorder %v1509_v25, %v1551_v9 }
 0x173   :  { %v1689_v33 = vsel %vm254_vm1, -inf, %v1487_v14  ;;  %v1695_v36 = vsel %vm256_vm2, -inf, %v1496_v18  ;;  %v1703_v42 = vsel %vm255_vm3, -inf, %v1504_v21  ;;  %v1709_v3 = vsel %vm257_vm4, -inf, %v1509_v25 }
 0x174   :  { %282 = vmax.xlane.f32.xlu0 %v1689_v33  ;;  %286 = vmax.xlane.f32.xlu1 %v1695_v36 }
 0x178   :  { %284 = vmax.xlane.f32.xlu0 %v1703_v42  ;;  %288 = vmax.xlane.f32.xlu1 %v1709_v3 }
 0x1fd   :  { %v1713_v4 = vpop.xlane.xlu0 %282  ;;  %v1715_v6 = vpop.xlane.xlu1 %286 }
 0x1fe   :  { %vm290_vm5 = vcmp.eq.f32.partialorder %v1689_v33, %v1713_v4  ;;  %vm292_vm6 = vcmp.eq.f32.partialorder %v1695_v36, %v1715_v6 }
 0x1ff   :  { %v1725_v7 = vsel %vm290_vm5, -inf, %v1689_v33  ;;  %v1734_v8 = vsel %vm292_vm6, -inf, %v1695_v36 }
 0x200   :  { %366 = vmax.xlane.f32.xlu0 %v1725_v7 }
 0x201   :  { %v1728_v50 = vpop.xlane.xlu0 %284  ;;  %v1736_v10 = vpop.xlane.xlu1 %288 }
 0x202   :  { %vm291_vm7 = vcmp.eq.f32.partialorder %v1703_v42, %v1728_v50  ;;  %vm293_vm8 = vcmp.eq.f32.partialorder %v1709_v3, %v1736_v10 }
 0x203   :  { %v1744_v12 = vsel %vm291_vm7, -inf, %v1703_v42  ;;  %v1754_v13 = vsel %vm293_vm8, -inf, %v1709_v3 }
 0x204   :  { %370 = vmax.xlane.f32.xlu0 %v1734_v8  ;;  %368 = vmax.xlane.f32.xlu1 %v1744_v12 }
 0x208   :  { %372 = vmax.xlane.f32.xlu1 %v1754_v13 }
 0x289   :  { %v1757_v16 = vpop.xlane.xlu0 %366 }
 0x28a   :  { %vm374_vm9 = vcmp.eq.f32.partialorder %v1725_v7, %v1757_v16 }
 0x28b   :  { %v1765_v17 = vsel %vm374_vm9, -inf, %v1725_v7 }
 0x28c   :  { %450 = vmax.xlane.f32.xlu0 %v1765_v17 }
 0x28d   :  { %v1768_v19 = vpop.xlane.xlu1 %368  ;;  %v1770_v23 = vpop.xlane.xlu0 %370 }
 0x28e   :  { %vm375_vm10 = vcmp.eq.f32.partialorder %v1744_v12, %v1768_v19  ;;  %vm376_vm11 = vcmp.eq.f32.partialorder %v1734_v8, %v1770_v23 }
 0x28f   :  { %v1780_v28 = vsel %vm375_vm10, -inf, %v1744_v12  ;;  %v1786_v30 = vsel %vm376_vm11, -inf, %v1734_v8 }
 0x290   :  { %452 = vmax.xlane.f32.xlu1 %v1780_v28  ;;  %454 = vmax.xlane.f32.xlu0 %v1786_v30 }
 0x291   :  { %v1790_v31 = vpop.xlane.xlu1 %372 }
 0x292   :  { %vm377_vm15 = vcmp.eq.f32.partialorder %v1754_v13, %v1790_v31 }
 0x293   :  { %v1798_v32 = vsel %vm377_vm15, -inf, %v1754_v13 }
 0x294   :  { %456 = vmax.xlane.f32.xlu1 %v1798_v32 }
 0x315   :  { %v1801_v35 = vpop.xlane.xlu0 %450 }
 0x316   :  { %vm458_vm14 = vcmp.eq.f32.partialorder %v1765_v17, %v1801_v35 }
 0x317   :  { %v1809_v37 = vsel %vm458_vm14, -inf, %v1765_v17 }
 0x318   :  { %534 = vmax.xlane.f32.xlu0 %v1809_v37 }
 0x319   :  { %v1812_v41 = vpop.xlane.xlu1 %452  ;;  %v1814_v43 = vpop.xlane.xlu0 %454 }
 0x31a   :  { %vm2513_vm13 = vcmp.eq.f32.partialorder %v1780_v28, %v1812_v41  ;;  %vm2515_vm0 = vcmp.eq.f32.partialorder %v1786_v30, %v1814_v43 }
 0x31b   :  { %v1824_v45 = vsel %vm2513_vm13, -inf, %v1780_v28  ;;  %v1830_v47 = vsel %vm2515_vm0, -inf, %v1786_v30 }
 0x31c   :  { %536 = vmax.xlane.f32.xlu1 %v1824_v45  ;;  %538 = vmax.xlane.f32.xlu0 %v1830_v47 }
 0x31d   :  { %v1834_v15 = vpop.xlane.xlu1 %456 }
 0x31e   :  { %vm2514_vm12 = vcmp.eq.f32.partialorder %v1798_v32, %v1834_v15 }
 0x31f   :  { %v1842_v34 = vsel %vm2514_vm12, -inf, %v1798_v32 }
 0x320   :  { %540 = vmax.xlane.f32.xlu1 %v1842_v34 }
 0x3a1   :  { %v1845_v40 = vpop.xlane.xlu0 %534 }
 0x3a2   :  { %vm2516_vm13 = vcmp.eq.f32.partialorder %v1809_v37, %v1845_v40 }
 0x3a3   :  { %v1853_v48 = vsel %vm2516_vm13, -inf, %v1809_v37 }
 0x3a4   :  { %618 = vmax.xlane.f32.xlu0 %v1853_v48 }
 0x3a5   :  { %v1856_v55 = vpop.xlane.xlu1 %536  ;;  %v1858_v56 = vpop.xlane.xlu0 %538 }
 0x3a6   :  { %vm2517_vm12 = vcmp.eq.f32.partialorder %v1824_v45, %v1856_v55  ;;  %vm2519_vm0 = vcmp.eq.f32.partialorder %v1830_v47, %v1858_v56 }
 0x3a7   :  { %v1868_v57 = vsel %vm2517_vm12, -inf, %v1824_v45  ;;  %v1874_v58 = vsel %vm2519_vm0, -inf, %v1830_v47 }
 0x3a8   :  { %620 = vmax.xlane.f32.xlu1 %v1868_v57  ;;  %622 = vmax.xlane.f32.xlu0 %v1874_v58 }
 0x3a9   :  { %v1878_v59 = vpop.xlane.xlu1 %540 }
 0x3aa   :  { %vm2518_vm13 = vcmp.eq.f32.partialorder %v1842_v34, %v1878_v59 }
 0x3ab   :  { %v1886_v26 = vsel %vm2518_vm13, -inf, %v1842_v34 }
 0x3ac   :  { %624 = vmax.xlane.f32.xlu1 %v1886_v26 }
 0x42d   :  { %v1889_v62 = vpop.xlane.xlu0 %618 }
 0x42e   :  { %vm2520_vm12 = vcmp.eq.f32.partialorder %v1853_v48, %v1889_v62 }
 0x42f   :  { %v1897_v20 = vsel %vm2520_vm12, -inf, %v1853_v48 }
 0x430   :  { %702 = vmax.xlane.f32.xlu0 %v1897_v20 }
 0x431   :  { %v1900_v63 = vpop.xlane.xlu1 %620  ;;  %v1902_v39 = vpop.xlane.xlu0 %622 }
 0x432   :  { %vm2522_vm13 = vcmp.eq.f32.partialorder %v1868_v57, %v1900_v63  ;;  %vm2527_vm0 = vcmp.eq.f32.partialorder %v1874_v58, %v1902_v39 }
 0x433   :  { %v1912_v29 = vsel %vm2522_vm13, -inf, %v1868_v57  ;;  %v1918_v61 = vsel %vm2527_vm0, -inf, %v1874_v58 }
 0x434   :  { %704 = vmax.xlane.f32.xlu1 %v1912_v29  ;;  %706 = vmax.xlane.f32.xlu0 %v1918_v61 }
 0x435   :  { %v1922_v60 = vpop.xlane.xlu1 %624 }
 0x436   :  { %vm2526_vm12 = vcmp.eq.f32.partialorder %v1886_v26, %v1922_v60 }
 0x437   :  { %v1930_v54 = vsel %vm2526_vm12, -inf, %v1886_v26 }
 0x438   :  { %2586 = vst [vmem:[#allocation28_spill] sm:$0xff] %v1930_v54  ;;  %708 = vmax.xlane.f32.xlu1 %v1930_v54 }
 0x4b9   :  { %v1933_v53 = vpop.xlane.xlu0 %702 }
 0x4ba   :  { %vm2531_vm13 = vcmp.eq.f32.partialorder %v1897_v20, %v1933_v53 }
 0x4bb   :  { %v1941_v22 = vsel %vm2531_vm13, -inf, %v1897_v20 }
 0x4bc   :  { %2587 = vst [vmem:[#allocation29_spill] sm:$0xff] %v1941_v22  ;;  %786 = vmax.xlane.f32.xlu0 %v1941_v22 }
 0x4bd   :  { %v1944_v52 = vpop.xlane.xlu1 %704  ;;  %v1946_v1 = vpop.xlane.xlu0 %706 }
 0x4be   :  { %vm2535_vm12 = vcmp.eq.f32.partialorder %v1912_v29, %v1944_v52  ;;  %vm2543_vm0 = vcmp.eq.f32.partialorder %v1918_v61, %v1946_v1 }
 0x4bf   :  { %v1956_v49 = vsel %vm2535_vm12, -inf, %v1912_v29  ;;  %v1962_v51 = vsel %vm2543_vm0, -inf, %v1918_v61 }
 0x4c0   :  { %2588 = vst [vmem:[#allocation30_spill] sm:$0xff] %v1956_v49  ;;  %788 = vmax.xlane.f32.xlu1 %v1956_v49  ;;  %790 = vmax.xlane.f32.xlu0 %v1962_v51 }
 0x4c1   :  { %v1966_v46 = vpop.xlane.xlu1 %708 }
 0x4c2   :  { %2589 = vst [vmem:[#allocation31_spill] sm:$0xff] %v1966_v46  ;;  %vm2542_vm13 = vcmp.eq.f32.partialorder %v1930_v54, %v1966_v46 }
 0x4c3   :  { %v1974_v38 = vsel %vm2542_vm13, -inf, %v1930_v54 }
 0x4c4   :  { %792 = vmax.xlane.f32.xlu1 %v1974_v38 }
 0x545   :  { %v1977_v44 = vpop.xlane.xlu0 %786 }
 0x546   :  { %2590 = vst [vmem:[#allocation32_spill] sm:$0xff] %v1977_v44  ;;  %vm794_vm12 = vcmp.eq.f32.partialorder %v1941_v22, %v1977_v44 }
 0x547   :  { %v1985_v24 = vsel %vm794_vm12, -inf, %v1941_v22  ;;  %v1454_v22 = vmov 0.0  }
 0x548   :  { %870 = vmax.xlane.f32.xlu0 %v1985_v24  ;;  %v1163_v14 = vsel %vm256_vm2, 1.0, %v1454_v22  ;;  %v1164_v0 = vsel %vm257_vm4, 1.0, %v1454_v22  ;;  %v1166_v33 = vsel %vm291_vm7, 1.0, %v1454_v22  ;;  %v1175_v36 = vsel %vm376_vm11, 1.0, %v1454_v22 }
 0x549   :  { %v1988_v27 = vpop.xlane.xlu1 %788  ;;  %v1990_v11 = vpop.xlane.xlu0 %790  ;;  %v1174_v42 = vsel %vm375_vm10, 1.0, %v1454_v22  ;;  %v1181_v3 = vsel %vm458_vm14, 1.0, %v1454_v22  ;;  %v1176_v7 = vsel %vm377_vm15, 1.0, %v1454_v22  ;;  %vm2597_vm14 = vcmp.eq.f32.partialorder %v1809_v37, %v1845_v40 }
 0x54a   :  { %2591 = vst [vmem:[#allocation33_spill] sm:$0xff] %v1988_v27  ;;  %2592 = vst [vmem:[#allocation34_spill] sm:$0xff] %v1990_v11  ;;  %vm2552_vm13 = vcmp.eq.f32.partialorder %v1956_v49, %v1988_v27  ;;  %vm796_vm0 = vcmp.eq.f32.partialorder %v1962_v51, %v1990_v11  ;;  %v1161_v27 = vsel %vm254_vm1, 1.0, %v1454_v22  ;;  %v1162_v11 = vsel %vm255_vm3, 1.0, %v1454_v22 }
 0x54b   :  { %v2000_v46 = vsel %vm2552_vm13, -inf, %v1956_v49  ;;  %v2006_v54 = vsel %vm796_vm0, -inf, %v1962_v51  ;;  %v1189_v13 = vsel %vm2597_vm14, 1.0, %v1454_v22  ;;  %vm2598_vm15 = vcmp.eq.f32.partialorder %v1798_v32, %v1834_v15 }
 0x54c   :  { %872 = vmax.xlane.f32.xlu1 %v2000_v46  ;;  %874 = vmax.xlane.f32.xlu0 %v2006_v54  ;;  %v1184_v17 = vsel %vm2598_vm15, 1.0, %v1454_v22  ;;  %vm2599_vm7 = vcmp.eq.f32.partialorder %v1830_v47, %v1858_v56  ;;  %vm2602_vm10 = vcmp.eq.f32.partialorder %v1842_v34, %v1878_v59  ;;  %vm2603_vm11 = vcmp.eq.f32.partialorder %v1874_v58, %v1902_v39 }
 0x54d   :  { %v2010_v44 = vpop.xlane.xlu1 %792  ;;  %v1192_v37 = vsel %vm2602_vm10, 1.0, %v1454_v22  ;;  %vm2606_vm14 = vcmp.eq.f32.partialorder %v1886_v26, %v1922_v60  ;;  %vm2607_vm15 = vcmp.eq.f32.partialorder %v1918_v61, %v1946_v1  ;;  %v1213_v26 = vsel %vm794_vm12, 1.0, %v1454_v22 }
 0x54e   :  { %2593 = vst [vmem:[#allocation35_spill] sm:$0xff] %v2010_v44  ;;  %vm797_vm13 = vcmp.eq.f32.partialorder %v1974_v38, %v2010_v44 }
 0x54f   :  { %v2022_v49 = vsel %vm797_vm13, -inf, %v1974_v38  ;;  %v322_v38 = vmax.f32 %v1713_v4, 0.2 }
 0x550   :  { %876 = vmax.xlane.f32.xlu1 %v2022_v49  ;;  %266 = vadd.xlane.f32.xlu0 %v1161_v27 }
 0x551   :  { %v2614_v61 = vld [vmem:[#allocation34_spill] sm:$0xff] }
 0x554   :  { %268 = vadd.xlane.f32.xlu1 %v1162_v11  ;;  %270 = vadd.xlane.f32.xlu0 %v1163_v14  ;;  %v1165_v11 = vsel %vm290_vm5, 1.0, %v1454_v22  ;;  %v1167_v14 = vsel %vm292_vm6, 1.0, %v1454_v22  ;;  %vm2595_vm5 = vcmp.eq.f32.partialorder %v1786_v30, %v1814_v43  ;;  %vm2596_vm6 = vcmp.eq.f32.partialorder %v1780_v28, %v1812_v41 }
 0x555   :  { %v1183_v8 = vsel %vm2595_vm5, 1.0, %v1454_v22  ;;  %v1182_v12 = vsel %vm2596_vm6, 1.0, %v1454_v22  ;;  %v1191_v28 = vsel %vm2599_vm7, 1.0, %v1454_v22  ;;  %vm2604_vm5 = vcmp.eq.f32.partialorder %v1868_v57, %v1900_v63 }
 0x556   :  { %v1198_v47 = vsel %vm2604_vm5, 1.0, %v1454_v22  ;;  %vm2605_vm6 = vcmp.eq.f32.partialorder %v1897_v20, %v1933_v53  ;;  %v1207_v57 = vsel %vm2607_vm15, 1.0, %v1454_v22  ;;  %vm2608_vm7 = vcmp.eq.f32.partialorder %v1912_v29, %v1944_v52 }
 0x557   :  { %v1205_v34 = vsel %vm2605_vm6, 1.0, %v1454_v22  ;;  %v1206_v58 = vsel %vm2608_vm7, 1.0, %v1454_v22  ;;  %v1215_v29 = vsel %vm796_vm0, 1.0, %v1454_v22 }
 0x558   :  { %272 = vadd.xlane.f32.xlu1 %v1164_v0  ;;  %v1173_v0 = vsel %vm374_vm9, 1.0, %v1454_v22  ;;  %vm2601_vm9 = vcmp.eq.f32.partialorder %v1853_v48, %v1889_v62  ;;  %v1200_v48 = vsel %vm2606_vm14, 1.0, %v1454_v22 }
 0x559   :  { %v1197_v32 = vsel %vm2601_vm9, 1.0, %v1454_v22 }
 0x5d1   :  { %v2037_v44 = vpop.xlane.xlu0 %870 }
 0x5d2   :  { %vm878_vm1 = vcmp.eq.f32.partialorder %v1985_v24, %v2037_v44 }
 0x5d3   :  { %v2045_v21 = vsel %vm878_vm1, -inf, %v1985_v24 }
 0x5d4   :  { %954 = vmax.xlane.f32.xlu0 %v2045_v21 }
 0x5d5   :  { %v2048_v18 = vpop.xlane.xlu1 %872  ;;  %v2050_v2 = vpop.xlane.xlu0 %874 }
 0x5d6   :  { %vm879_vm2 = vcmp.eq.f32.partialorder %v2000_v46, %v2048_v18  ;;  %vm880_vm3 = vcmp.eq.f32.partialorder %v2006_v54, %v2050_v2 }
 0x5d7   :  { %v2058_v25 = vsel %vm879_vm2, -inf, %v2000_v46  ;;  %v2067_v5 = vsel %vm880_vm3, -inf, %v2006_v54  ;;  %v1223_v51 = vsel %vm880_vm3, 1.0, %v1454_v22  ;;  %v323_v54 = vmax.f32 %v1728_v50, 0.2 }
 0x5d8   :  { %956 = vmax.xlane.f32.xlu1 %v2058_v25  ;;  %958 = vmax.xlane.f32.xlu0 %v2067_v5  ;;  %v407_v46 = vmax.f32 %v1768_v19, 0.2  ;;  %v491_v50 = vmax.f32 %v1812_v41, 0.2  ;;  %vm2633_vm3 = vcmask 7168  }
 0x5d9   :  { %v2070_v9 = vpop.xlane.xlu1 %876  ;;  %vm2637_vm10 = vmmov %vm2633_vm3 }
 0x5da   :  { %2594 = vst [vmem:[#allocation36_spill] sm:$0xff] %v2070_v9  ;;  %vm881_vm4 = vcmp.eq.f32.partialorder %v2022_v49, %v2070_v9  ;;  %vm2641_vm5 = vmmov %vm2633_vm3 }
 0x5db   :  { %v2082_v27 = vsel %vm881_vm4, -inf, %v2022_v49  ;;  %v1224_v24 = vsel %vm881_vm4, 1.0, %v1454_v22  ;;  %vm2645_vm14 = vmmov %vm2633_vm3 }
 0x5dc   :  { %302 = vadd.xlane.f32.xlu0 %v1165_v11  ;;  %960 = vmax.xlane.f32.xlu1 %v2082_v27  ;;  %v1168_v11 = vsel %vm293_vm8, 1.0, %v1454_v22  ;;  %vm2600_vm8 = vcmp.eq.f32.partialorder %v1824_v45, %v1856_v55  ;;  %v1199_v45 = vsel %vm2603_vm11, 1.0, %v1454_v22 }
 0x5dd   :  { %v1190_v30 = vsel %vm2600_vm8, 1.0, %v1454_v22 }
 0x5e0   :  { %306 = vadd.xlane.f32.xlu0 %v1167_v14  ;;  %304 = vadd.xlane.f32.xlu1 %v1166_v33  ;;  %v2610_v14 = vld [vmem:[#allocation32_spill] sm:$0xff] }
 0x5e1   :  { %v2611_v33 = vld [vmem:[#allocation28_spill] sm:$0xff] }
 0x5e4   :  { %386 = vadd.xlane.f32.xlu0 %v1173_v0  ;;  %308 = vadd.xlane.f32.xlu1 %v1168_v11  ;;  %v2612_v0 = vld [vmem:[#allocation31_spill] sm:$0xff] }
 0x5e5   :  { %vm2613_vm8 = vcmp.eq.f32.partialorder %v2611_v33, %v2612_v0 }
 0x5e6   :  { %v1208_v11 = vsel %vm2613_vm8, 1.0, %v1454_v22 }
 0x5e8   :  { %390 = vadd.xlane.f32.xlu0 %v1175_v36  ;;  %388 = vadd.xlane.f32.xlu1 %v1174_v42  ;;  %v2615_v36 = vld [vmem:[#allocation30_spill] sm:$0xff]  ;;  %v2616_v42 = vld [vmem:[#allocation33_spill] sm:$0xff] }
 0x5e9   :  { %vm2617_vm9 = vcmp.eq.f32.partialorder %v2615_v36, %v2616_v42 }
 0x5ec   :  { %470 = vadd.xlane.f32.xlu0 %v1181_v3  ;;  %392 = vadd.xlane.f32.xlu1 %v1176_v7  ;;  %v1214_v3 = vsel %vm2617_vm9, 1.0, %v1454_v22  ;;  %v1221_v7 = vsel %vm878_vm1, 1.0, %v1454_v22 }
 0x5f0   :  { %474 = vadd.xlane.f32.xlu0 %v1183_v8  ;;  %472 = vadd.xlane.f32.xlu1 %v1182_v12  ;;  %v2618_v8 = vld [vmem:[#allocation35_spill] sm:$0xff]  ;;  %v1216_v12 = vsel %vm797_vm13, 1.0, %v1454_v22 }
 0x5f4   :  { %554 = vadd.xlane.f32.xlu0 %v1189_v13  ;;  %476 = vadd.xlane.f32.xlu1 %v1184_v17  ;;  %v1222_v13 = vsel %vm879_vm2, 1.0, %v1454_v22  ;;  %v324_v17 = vmax.f32 %v1715_v6, 0.2 }
 0x5f8   :  { %558 = vadd.xlane.f32.xlu0 %v1191_v28  ;;  %556 = vadd.xlane.f32.xlu1 %v1190_v30  ;;  %v406_v28 = vmax.f32 %v1757_v16, 0.2  ;;  %v1169_v30 = vadd.f32 -0.2, %v322_v38  ;;  %v492_v16 = vmax.f32 %v1814_v43, 0.2 }
 0x5f9   :  { %v2620_v38 = vld [vmem:[#allocation14_spill] sm:$0xff]  ;;  %v2621_v43 = vld [vmem:[#allocation13_spill] sm:$0xff] }
 0x5fa   :  { %v1177_v49 = vadd.f32 -0.2, %v406_v28 }
 0x5fc   :  { %638 = vadd.xlane.f32.xlu0 %v1197_v32  ;;  %560 = vadd.xlane.f32.xlu1 %v1192_v37  ;;  %v1171_v32 = vadd.f32 -0.2, %v324_v17  ;;  %v408_v37 = vmax.f32 %v1770_v23, 0.2  ;;  %v414_v20 = vmul.f32 %v1177_v49, %v1177_v49  ;;  %v574_v23 = vmax.f32 %v1845_v40, 0.2 }
 0x5fd   :  { %v575_v49 = vmax.f32 %v1856_v55, 0.2 }
 0x5fe   :  { %v1179_v4 = vadd.f32 -0.2, %v408_v37  ;;  %v418_v36 = vmul.f32 64.0, %v414_v20  ;;  %v269_v37 = vpop.xlane.xlu1 %268  ;;  %v576_v20 = vmax.f32 %v1858_v56, 0.2 }
 0x600   :  { %642 = vadd.xlane.f32.xlu0 %v1199_v45  ;;  %640 = vadd.xlane.f32.xlu1 %v1198_v47  ;;  %v1170_v45 = vadd.f32 -0.2, %v323_v54  ;;  %v490_v47 = vmax.f32 %v1801_v35, 0.2  ;;  %v1193_v54 = vadd.f32 -0.2, %v574_v23 }
 0x602   :  { %v1185_v6 = vadd.f32 -0.2, %v490_v47 }
 0x604   :  { %722 = vadd.xlane.f32.xlu0 %v1205_v34  ;;  %644 = vadd.xlane.f32.xlu1 %v1200_v48  ;;  %v330_v34 = vmul.f32 %v1169_v30, %v1169_v30  ;;  %v1178_v48 = vadd.f32 -0.2, %v407_v46  ;;  %v498_v35 = vmul.f32 %v1185_v6, %v1185_v6 }
 0x606   :  { %v415_v19 = vmul.f32 %v1178_v48, %v1178_v48  ;;  %v502_v30 = vmul.f32 64.0, %v498_v35 }
 0x608   :  { %726 = vadd.xlane.f32.xlu0 %v1207_v57  ;;  %724 = vadd.xlane.f32.xlu1 %v1206_v58  ;;  %v332_v57 = vmul.f32 %v1171_v32, %v1171_v32  ;;  %v331_v58 = vmul.f32 %v1170_v45, %v1170_v45 }
 0x60a   :  { %v336_v33 = vmul.f32 64.0, %v332_v57  ;;  %v582_v57 = vmul.f32 %v1193_v54, %v1193_v54 }
 0x60c   :  { %806 = vadd.xlane.f32.xlu0 %v1213_v26  ;;  %728 = vadd.xlane.f32.xlu1 %v1208_v11  ;;  %v334_v26 = vmul.f32 64.0, %v330_v34  ;;  %v416_v11 = vmul.f32 %v1179_v4, %v1179_v4  ;;  %v340_v17 = vsub.f32 %v336_v33, %v2620_v38  ;;  %v1194_v33 = vadd.f32 -0.2, %v575_v49 }
 0x60d   :  { %v586_v23 = vmul.f32 64.0, %v582_v57 }
 0x60e   :  { %v420_v41 = vmul.f32 64.0, %v416_v11  ;;  %v346_v34 = vmul.f32 1.442695, %v340_v17  ;;  %v658_v11 = vmax.f32 %v1889_v62, 0.2 }
 0x610   :  { %810 = vadd.xlane.f32.xlu0 %v1215_v29  ;;  %808 = vadd.xlane.f32.xlu1 %v1214_v3  ;;  %v335_v29 = vmul.f32 64.0, %v331_v58  ;;  %v1186_v3 = vadd.f32 -0.2, %v491_v50  ;;  %v424_v48 = vsub.f32 %v420_v41, %v2620_v38  ;;  %v1201_v62 = vadd.f32 -0.2, %v658_v11 }
 0x611   :  { %v659_v41 = vmax.f32 %v1900_v63, 0.2  ;;  %v2249_v63 = vmin.f32 %v269_v37, 10.0 }
 0x612   :  { %v339_v28 = vsub.f32 %v335_v29, %v2621_v43  ;;  %v499_v32 = vmul.f32 %v1186_v3, %v1186_v3  ;;  %v430_v55 = vmul.f32 1.442695, %v424_v48  ;;  %v2229_v29 = vpop.xlane.xlu1 %272  ;;  %v666_v49 = vmul.f32 %v1201_v62, %v1201_v62 }
 0x614   :  { %890 = vadd.xlane.f32.xlu0 %v1221_v7  ;;  %812 = vadd.xlane.f32.xlu1 %v1216_v12  ;;  %v1187_v7 = vadd.f32 -0.2, %v492_v16  ;;  %v267_v12 = vpop.xlane.xlu0 %266  ;;  %v344_v58 = vmul.f32 1.442695, %v339_v28  ;;  %v503_v16 = vmul.f32 64.0, %v499_v32 }
 0x616   :  { %v500_v40 = vmul.f32 %v1187_v7, %v1187_v7  ;;  %v507_v3 = vsub.f32 %v503_v16, %v2621_v43  ;;  %v2233_v7 = vmin.f32 %v267_v12, 10.0  ;;  %v660_v12 = vmax.f32 %v1902_v39, 0.2 }
 0x618   :  { %894 = vadd.xlane.f32.xlu0 %v1223_v51  ;;  %892 = vadd.xlane.f32.xlu1 %v1222_v13  ;;  %v2619_v51 = vld [vmem:[#allocation12_spill] sm:$0xff]  ;;  %v271_v4 = vpop.xlane.xlu0 %270 }
 0x619   :  { %v338_v13 = vsub.f32 %v334_v26, %v2619_v51  ;;  %v422_v46 = vsub.f32 %v418_v36, %v2619_v51  ;;  %v506_v6 = vsub.f32 %v502_v30, %v2619_v51  ;;  %v504_v26 = vmul.f32 64.0, %v500_v40 }
 0x61a   :  { %v1195_v36 = vadd.f32 -0.2, %v576_v20  ;;  %v590_v17 = vsub.f32 %v586_v23, %v2619_v51  ;;  %v742_v30 = vmax.f32 %v1933_v53, 0.2  ;;  %v2244_v40 = vmin.f32 %v271_v4, 10.0 }
 0x61b   :  { %v342_v45 = vmul.f32 1.442695, %v338_v13  ;;  %v426_v50 = vmul.f32 1.442695, %v422_v46  ;;  %v510_v35 = vmul.f32 1.442695, %v506_v6  ;;  %v508_v56 = vsub.f32 %v504_v26, %v2620_v38 }
 0x61c   :  { %896 = vadd.xlane.f32.xlu1 %v1224_v24  ;;  %v419_v24 = vmul.f32 64.0, %v415_v19  ;;  %v584_v28 = vmul.f32 %v1195_v36, %v1195_v36  ;;  %v512_v46 = vmul.f32 1.442695, %v507_v3  ;;  %v594_v39 = vmul.f32 1.442695, %v590_v17 }
 0x61d   :  { %1287 = vpow2.f32 %v342_v45  ;;  %v514_v32 = vmul.f32 1.442695, %v508_v56  ;;  %v1202_v53 = vadd.f32 -0.2, %v659_v41  ;;  %v1203_v4 = vadd.f32 -0.2, %v660_v12 }
 0x61e   :  { %v423_v47 = vsub.f32 %v419_v24, %v2621_v43  ;;  %1289 = vpow2.f32 %v346_v34  ;;  %v583_v24 = vmul.f32 %v1194_v33, %v1194_v33  ;;  %v588_v57 = vmul.f32 64.0, %v584_v28 }
 0x61f   :  { %1291 = vpow2.f32 %v344_v58  ;;  %v1209_v58 = vadd.f32 -0.2, %v742_v30  ;;  %v312_v20 = vsub.f32 10.0, %v2244_v40  ;;  %v311_v26 = vsub.f32 10.0, %v2249_v63 }
 0x620   :  { %v428_v19 = vmul.f32 1.442695, %v423_v47  ;;  %1293 = vpow2.f32 %v426_v50  ;;  %v587_v47 = vmul.f32 64.0, %v583_v24  ;;  %v670_v50 = vmul.f32 64.0, %v666_v49 }
 0x621   :  { %v592_v23 = vsub.f32 %v588_v57, %v2620_v38  ;;  %v750_v36 = vmul.f32 %v1209_v58, %v1209_v58  ;;  %v316_v17 = vmax.f32 %v312_v20, 0.0  ;;  %v743_v12 = vmax.f32 %v1944_v52, 0.2 }
 0x622   :  { %1295 = vpow2.f32 %v428_v19  ;;  %v674_v28 = vsub.f32 %v670_v50, %v2619_v51  ;;  %v315_v30 = vmax.f32 %v311_v26, 0.0  ;;  %v2280_v57 = vmin.f32 %v2229_v29, 10.0 }
 0x623   :  { %1297 = vpow2.f32 %v430_v55  ;;  %v2282_v58 = vmul.f32 1.442695, %v592_v23  ;;  %v826_v29 = vmax.f32 %v2610_v14, 0.2 }
 0x624   :  { %1299 = vpow2.f32 %v510_v35  ;;  %v668_v35 = vmul.f32 %v1203_v4, %v1203_v4  ;;  %2623 = vst [vmem:[#allocation32_spill] sm:$0xff] %v2280_v57  ;;  %v678_v20 = vmul.f32 1.442695, %v674_v28 }
 0x625   :  { %1301 = vpow2.f32 %v512_v46 }
 0x626   :  { %1303 = vpow2.f32 %v514_v32 }
 0x627   :  { %1305 = vpow2.f32 %v594_v39 }
 0x62a   :  { %v1288_v19 = vpop.eup %1287 }
 0x62b   :  { %v2264_v55 = vpop.eup %1289 }
 0x62c   :  { %v1292_v3 = vpop.eup %1291 }
 0x62d   :  { %v1294_v41 = vpop.eup %1293 }
 0x62f   :  { %v1296_v32 = vpop.eup %1295 }
 0x65d   :  { %v2235_v13 = vpop.xlane.xlu0 %954 }
 0x65e   :  { %vm962_vm12 = vcmp.eq.f32.partialorder %v2045_v21, %v2235_v13  ;;  %v310_v21 = vsub.f32 10.0, %v2233_v7 }
 0x65f   :  { %v1229_v54 = vsel %vm962_vm12, 1.0, %v1454_v22 }
 0x660   :  { %974 = vadd.xlane.f32.xlu0 %v1229_v54  ;;  %v314_v37 = vmax.f32 %v310_v21, 0.0 }
 0x661   :  { %v2246_v45 = vpop.xlane.xlu1 %956  ;;  %v2251_v34 = vpop.xlane.xlu0 %958 }
 0x662   :  { %vm963_vm13 = vcmp.eq.f32.partialorder %v2058_v25, %v2246_v45  ;;  %vm964_vm0 = vcmp.eq.f32.partialorder %v2067_v5, %v2251_v34  ;;  %v591_v25 = vsub.f32 %v587_v47, %v2621_v43  ;;  %v667_v5 = vmul.f32 %v1202_v53, %v1202_v53  ;;  %v2276_v53 = vpop.eup %1297 }
 0x663   :  { %v1230_v48 = vsel %vm963_vm13, 1.0, %v1454_v22  ;;  %v1231_v6 = vsel %vm964_vm0, 1.0, %v1454_v22  ;;  %v1300_v4 = vpop.eup %1299 }
 0x664   :  { %976 = vadd.xlane.f32.xlu1 %v1230_v48  ;;  %978 = vadd.xlane.f32.xlu0 %v1231_v6  ;;  %v596_v54 = vmul.f32 1.442695, %v591_v25  ;;  %v671_v21 = vmul.f32 64.0, %v667_v5  ;;  %v744_v48 = vmax.f32 %v1946_v1, 0.2  ;;  %v754_v6 = vmul.f32 64.0, %v750_v36  ;;  %v1302_v28 = vpop.eup %1301 }
 0x665   :  { %v303_v16 = vpop.xlane.xlu0 %302  ;;  %v2262_v33 = vpop.xlane.xlu1 %960  ;;  %v1210_v25 = vadd.f32 -0.2, %v743_v12 }
 0x666   :  { %2622 = vst [vmem:[#allocation29_spill] sm:$0xff] %v2262_v33  ;;  %v318_v11 = vmin.f32 %v303_v16, %v314_v37  ;;  %vm965_vm1 = vcmp.eq.f32.partialorder %v2082_v27, %v2262_v33  ;;  %1307 = vpow2.f32 %v596_v54  ;;  %v675_v1 = vsub.f32 %v671_v21, %v2621_v43  ;;  %v2292_v21 = vpop.eup %1303 }
 0x667   :  { %v1232_v62 = vsel %vm965_vm1, 1.0, %v1454_v22  ;;  %v672_v22 = vmul.f32 64.0, %v668_v35  ;;  %v1211_v23 = vadd.f32 -0.2, %v744_v48  ;;  %v313_v35 = vsub.f32 10.0, %v2280_v57 }
 0x668   :  { %v350_v56 = vmul.f32 %v1288_v19, %v318_v11  ;;  %v358_v24 = vadd.f32 %v318_v11, %v2233_v7  ;;  %980 = vadd.xlane.f32.xlu1 %v1232_v62  ;;  %1309 = vpow2.f32 %v678_v20  ;;  %v751_v12 = vmul.f32 %v1210_v25, %v1210_v25 }
 0x669   :  { %v307_v46 = vpop.xlane.xlu0 %306  ;;  %v305_v47 = vpop.xlane.xlu1 %304  ;;  %v676_v11 = vsub.f32 %v672_v22, %v2620_v38  ;;  %v680_v33 = vmul.f32 1.442695, %v675_v1 }
 0x66a   :  { %v354_v27 = vadd.f32 %v350_v56, %v2233_v7  ;;  %v2274_v49 = vmin.f32 %v307_v46, %v316_v17  ;;  %v394_v39 = vsub.f32 10.0, %v358_v24  ;;  %v319_v52 = vmin.f32 %v305_v47, %v315_v30 }
 0x66b   :  { %v758_v56 = vsub.f32 %v754_v6, %v2619_v51  ;;  %v1217_v47 = vadd.f32 -0.2, %v826_v29  ;;  %v752_v6 = vmul.f32 %v1211_v23, %v1211_v23  ;;  %1311 = vpow2.f32 %v680_v33 }
 0x66c   :  { %v360_v7 = vadd.f32 %v2274_v49, %v2244_v40  ;;  %v398_v37 = vmax.f32 %v394_v39, 0.0  ;;  %v359_v50 = vadd.f32 %v319_v52, %v2249_v63  ;;  %v351_v30 = vmul.f32 %v1292_v3, %v319_v52 }
 0x66d   :  { %v387_v16 = vpop.xlane.xlu0 %386  ;;  %v309_v26 = vpop.xlane.xlu1 %308  ;;  %v762_v20 = vmul.f32 1.442695, %v758_v56 }
 0x66e   :  { %v402_v19 = vmin.f32 %v387_v16, %v398_v37  ;;  %v396_v5 = vsub.f32 10.0, %v360_v7  ;;  %v395_v36 = vsub.f32 10.0, %v359_v50  ;;  %v1306_v16 = vpop.eup %1305  ;;  %v355_v25 = vadd.f32 %v351_v30, %v2249_v63 }
 0x66f   :  { %1313 = vpow2.f32 %v762_v20  ;;  %v912_v20 = vmax.f32 %v2050_v2, 0.2 }
 0x670   :  { %v434_v62 = vmul.f32 %v1294_v41, %v402_v19  ;;  %v442_v17 = vadd.f32 %v402_v19, %v358_v24  ;;  %v400_v54 = vmax.f32 %v396_v5, 0.0  ;;  %v399_v46 = vmax.f32 %v395_v36, 0.0 }
 0x671   :  { %v391_v14 = vpop.xlane.xlu0 %390  ;;  %v389_v22 = vpop.xlane.xlu1 %388  ;;  %v317_v41 = vmax.f32 %v313_v35, 0.0  ;;  %v2296_v19 = vmul.f32 1.442695, %v676_v11  ;;  %v756_v35 = vmul.f32 64.0, %v752_v6  ;;  %v827_v11 = vmax.f32 %v2616_v42, 0.2 }
 0x672   :  { %v438_v39 = vadd.f32 %v434_v62, %v354_v27  ;;  %v2294_v48 = vmin.f32 %v391_v14, %v400_v54  ;;  %v478_v37 = vsub.f32 10.0, %v442_v17  ;;  %v403_v24 = vmin.f32 %v389_v22, %v399_v46 }
 0x673   :  { %v2300_v5 = vmin.f32 %v309_v26, %v317_v41  ;;  %v755_v62 = vmul.f32 64.0, %v751_v12  ;;  %v834_v54 = vmul.f32 %v1217_v47, %v1217_v47  ;;  %v1308_v47 = vpop.eup %1307 }
 0x674   :  { %v444_v3 = vadd.f32 %v2294_v48, %v360_v7  ;;  %v482_v52 = vmax.f32 %v478_v37, 0.0  ;;  %v435_v27 = vmul.f32 %v1296_v32, %v403_v24  ;;  %v443_v29 = vadd.f32 %v403_v24, %v359_v50 }
 0x675   :  { %2624 = vst [vmem:[#allocation28_spill] sm:$0xff] %v2300_v5  ;;  %v471_v36 = vpop.xlane.xlu0 %470  ;;  %v2302_v14 = vpop.xlane.xlu1 %392  ;;  %v828_v7 = vmax.f32 %v2614_v61, 0.2  ;;  %v910_v32 = vmax.f32 %v2037_v44, 0.2  ;;  %v2309_v50 = vadd.f32 %v2300_v5, %v2280_v57  ;;  %v838_v37 = vmul.f32 64.0, %v834_v54 }
 0x676   :  { %v486_v1 = vmin.f32 %v471_v36, %v482_v52  ;;  %v480_v23 = vsub.f32 10.0, %v444_v3  ;;  %v439_v56 = vadd.f32 %v435_v27, %v355_v25  ;;  %v479_v46 = vsub.f32 10.0, %v443_v29 }
 0x677   :  { %v759_v61 = vsub.f32 %v755_v62, %v2621_v43  ;;  %v760_v44 = vsub.f32 %v756_v35, %v2620_v38  ;;  %v1225_v27 = vadd.f32 -0.2, %v910_v32  ;;  %v397_v36 = vsub.f32 10.0, %v2309_v50 }
 0x678   :  { %v518_v22 = vmul.f32 %v1300_v4, %v486_v1  ;;  %v526_v63 = vadd.f32 %v486_v1, %v442_v17  ;;  %v484_v26 = vmax.f32 %v480_v23, 0.0  ;;  %v483_v12 = vmax.f32 %v479_v46, 0.0  ;;  %v1310_v23 = vpop.eup %1309 }
 0x679   :  { %v475_v30 = vpop.xlane.xlu0 %474  ;;  %v473_v42 = vpop.xlane.xlu1 %472  ;;  %v1218_v4 = vadd.f32 -0.2, %v827_v11  ;;  %v1219_v17 = vadd.f32 -0.2, %v828_v7  ;;  %v842_v46 = vsub.f32 %v838_v37, %v2619_v51  ;;  %v911_v7 = vmax.f32 %v2048_v18, 0.2 }
 0x67a   :  { %v522_v6 = vadd.f32 %v518_v22, %v438_v39  ;;  %v2311_v41 = vmin.f32 %v475_v30, %v484_v26  ;;  %v562_v24 = vsub.f32 10.0, %v526_v63  ;;  %v487_v33 = vmin.f32 %v473_v42, %v483_v12 }
 0x67b   :  { %v835_v35 = vmul.f32 %v1218_v4, %v1218_v4  ;;  %v836_v32 = vmul.f32 %v1219_v17, %v1219_v17  ;;  %v918_v42 = vmul.f32 %v1225_v27, %v1225_v27  ;;  %v1227_v57 = vadd.f32 -0.2, %v912_v20 }
 0x67c   :  { %v528_v52 = vadd.f32 %v2311_v41, %v444_v3  ;;  %v566_v25 = vmax.f32 %v562_v24, 0.0  ;;  %v519_v54 = vmul.f32 %v1302_v28, %v487_v33  ;;  %v527_v39 = vadd.f32 %v487_v33, %v443_v29 }
 0x67d   :  { %v555_v1 = vpop.xlane.xlu0 %554  ;;  %v2319_v62 = vpop.xlane.xlu1 %476  ;;  %v764_v29 = vmul.f32 1.442695, %v759_v61  ;;  %v401_v24 = vmax.f32 %v397_v36, 0.0  ;;  %v766_v4 = vmul.f32 1.442695, %v760_v44  ;;  %v840_v17 = vmul.f32 64.0, %v836_v32 }
 0x67e   :  { %v570_v11 = vmin.f32 %v555_v1, %v566_v25  ;;  %v564_v22 = vsub.f32 10.0, %v528_v52  ;;  %v523_v3 = vadd.f32 %v519_v54, %v439_v56  ;;  %v563_v26 = vsub.f32 10.0, %v527_v39 }
 0x67f   :  { %v839_v1 = vmul.f32 64.0, %v835_v35  ;;  %v1226_v18 = vadd.f32 -0.2, %v911_v7  ;;  %v846_v54 = vmul.f32 1.442695, %v842_v46  ;;  %v922_v61 = vmul.f32 64.0, %v918_v42 }
 0x680   :  { %v602_v12 = vmul.f32 %v1306_v16, %v570_v11  ;;  %v610_v30 = vadd.f32 %v570_v11, %v526_v63  ;;  %v568_v28 = vmax.f32 %v564_v22, 0.0  ;;  %v567_v33 = vmax.f32 %v563_v26, 0.0  ;;  %v1312_v11 = vpop.eup %1311 }
 0x681   :  { %v559_v37 = vpop.xlane.xlu0 %558  ;;  %v557_v5 = vpop.xlane.xlu1 %556  ;;  %v2326_v27 = vmin.f32 %v2302_v14, %v401_v24  ;;  %1315 = vpow2.f32 %v764_v29  ;;  %v920_v22 = vmul.f32 %v1227_v57, %v1227_v57  ;;  %v919_v46 = vmul.f32 %v1226_v18, %v1226_v18 }
 0x682   :  { %v606_v2 = vadd.f32 %v602_v12, %v522_v6  ;;  %v2322_v9 = vmin.f32 %v559_v37, %v568_v28  ;;  %v646_v25 = vsub.f32 10.0, %v610_v30  ;;  %v571_v56 = vmin.f32 %v557_v5, %v567_v33  ;;  %v1314_v32 = vpop.eup %1313 }
 0x683   :  { %v843_v5 = vsub.f32 %v839_v1, %v2621_v43  ;;  %v844_v12 = vsub.f32 %v840_v17, %v2620_v38  ;;  %1317 = vpow2.f32 %v846_v54  ;;  %v2335_v57 = vadd.f32 %v2326_v27, %v2309_v50 }
 0x684   :  { %v612_v16 = vadd.f32 %v2322_v9, %v528_v52  ;;  %v650_v63 = vmax.f32 %v646_v25, 0.0  ;;  %v603_v36 = vmul.f32 %v1308_v47, %v571_v56  ;;  %v611_v20 = vadd.f32 %v571_v56, %v527_v39 }
 0x685   :  { %v639_v6 = vpop.xlane.xlu0 %638  ;;  %v2328_v26 = vpop.xlane.xlu1 %560  ;;  %v926_v39 = vsub.f32 %v922_v61, %v2619_v51  ;;  %v924_v24 = vmul.f32 64.0, %v920_v22  ;;  %1319 = vpow2.f32 %v2282_v58  ;;  %v850_v18 = vmul.f32 1.442695, %v844_v12 }
 0x686   :  { %v654_v44 = vmin.f32 %v639_v6, %v650_v63  ;;  %v648_v35 = vsub.f32 10.0, %v612_v16  ;;  %v607_v7 = vadd.f32 %v603_v36, %v523_v3  ;;  %v647_v52 = vsub.f32 10.0, %v611_v20 }
 0x687   :  { %1321 = vpow2.f32 %v2296_v19  ;;  %v930_v54 = vmul.f32 1.442695, %v926_v39  ;;  %v481_v17 = vsub.f32 10.0, %v2335_v57  ;;  %v928_v36 = vsub.f32 %v924_v24, %v2620_v38 }
 0x688   :  { %v686_v14 = vmul.f32 %v1310_v23, %v654_v44  ;;  %v694_v28 = vadd.f32 %v654_v44, %v610_v30  ;;  %v652_v47 = vmax.f32 %v648_v35, 0.0  ;;  %v651_v29 = vmax.f32 %v647_v52, 0.0 }
 0x689   :  { %v643_v42 = vpop.xlane.xlu0 %642  ;;  %v641_v37 = vpop.xlane.xlu1 %640  ;;  %v848_v23 = vmul.f32 1.442695, %v843_v5  ;;  %v923_v30 = vmul.f32 64.0, %v919_v46  ;;  %1323 = vpow2.f32 %v766_v4  ;;  %v934_v4 = vmul.f32 1.442695, %v928_v36 }
 0x68a   :  { %v690_v33 = vadd.f32 %v686_v14, %v606_v2  ;;  %v2337_v3 = vmin.f32 %v643_v42, %v652_v47  ;;  %v730_v25 = vsub.f32 10.0, %v694_v28  ;;  %v655_v1 = vmin.f32 %v641_v37, %v651_v29 }
 0x68b   :  { %1325 = vpow2.f32 %v848_v23  ;;  %v927_v19 = vsub.f32 %v923_v30, %v2621_v43  ;;  %v352_v24 = vmul.f32 %v2264_v55, %v2274_v49 }
 0x68c   :  { %v696_v56 = vadd.f32 %v2337_v3, %v612_v16  ;;  %v734_v50 = vmax.f32 %v730_v25, 0.0  ;;  %v687_v63 = vmul.f32 %v1312_v11, %v655_v1  ;;  %v695_v2 = vadd.f32 %v655_v1, %v611_v20 }
 0x68d   :  { %v723_v61 = vpop.xlane.xlu0 %722  ;;  %v2344_v6 = vpop.xlane.xlu1 %644  ;;  %1327 = vpow2.f32 %v850_v18  ;;  %v485_v11 = vmax.f32 %v481_v17, 0.0  ;;  %v932_v42 = vmul.f32 1.442695, %v927_v19  ;;  %v356_v55 = vadd.f32 %v352_v24, %v2244_v40 }
 0x68e   :  { %v738_v58 = vmin.f32 %v723_v61, %v734_v50  ;;  %v732_v22 = vsub.f32 10.0, %v696_v56  ;;  %v691_v44 = vadd.f32 %v687_v63, %v607_v7  ;;  %v731_v35 = vsub.f32 10.0, %v695_v2  ;;  %v1316_v29 = vpop.eup %1315 }
 0x68f   :  { %1329 = vpow2.f32 %v930_v54 }
 0x690   :  { %v770_v16 = vmul.f32 %v1314_v32, %v738_v58  ;;  %v778_v5 = vadd.f32 %v738_v58, %v694_v28  ;;  %v736_v46 = vmax.f32 %v732_v22, 0.0  ;;  %v735_v20 = vmax.f32 %v731_v35, 0.0  ;;  %v1318_v1 = vpop.eup %1317 }
 0x691   :  { %v727_v52 = vpop.xlane.xlu0 %726  ;;  %v725_v14 = vpop.xlane.xlu1 %724  ;;  %v436_v32 = vmul.f32 %v2276_v53, %v2294_v48  ;;  %v2352_v28 = vmin.f32 %v2319_v62, %v485_v11  ;;  %1331 = vpow2.f32 %v934_v4  ;;  %v520_v53 = vmul.f32 %v2292_v21, %v2311_v41 }
 0x692   :  { %v774_v12 = vadd.f32 %v770_v16, %v690_v33  ;;  %v740_v47 = vmin.f32 %v727_v52, %v736_v46  ;;  %v814_v39 = vsub.f32 10.0, %v778_v5  ;;  %v739_v7 = vmin.f32 %v725_v14, %v735_v20  ;;  %v1320_v17 = vpop.eup %1319 }
 0x693   :  { %1333 = vpow2.f32 %v932_v42  ;;  %v440_v61 = vadd.f32 %v436_v32, %v356_v55  ;;  %v529_v36 = vadd.f32 %v2352_v28, %v2335_v57  ;;  %v604_v19 = vmul.f32 %v1320_v17, %v2322_v9 }
 0x694   :  { %v780_v37 = vadd.f32 %v740_v47, %v696_v56  ;;  %v818_v25 = vmax.f32 %v814_v39, 0.0  ;;  %v771_v23 = vmul.f32 %v1316_v29, %v739_v7  ;;  %v779_v30 = vadd.f32 %v739_v7, %v695_v2  ;;  %v1322_v2 = vpop.eup %1321 }
 0x695   :  { %v807_v33 = vpop.xlane.xlu0 %806  ;;  %v2354_v18 = vpop.xlane.xlu1 %728  ;;  %v688_v11 = vmul.f32 %v1322_v2, %v2337_v3  ;;  %v565_v57 = vsub.f32 10.0, %v529_v36 }
 0x696   :  { %v822_v50 = vmin.f32 %v807_v33, %v818_v25  ;;  %v816_v54 = vsub.f32 10.0, %v780_v37  ;;  %v775_v49 = vadd.f32 %v771_v23, %v691_v44  ;;  %v815_v56 = vsub.f32 10.0, %v779_v30  ;;  %v1324_v46 = vpop.eup %1323 }
 0x697   :  { %v772_v42 = vmul.f32 %v1324_v46, %v740_v47 }
 0x698   :  { %v854_v48 = vmul.f32 %v1318_v1, %v822_v50  ;;  %v2359_v62 = vadd.f32 %v822_v50, %v778_v5  ;;  %v820_v63 = vmax.f32 %v816_v54, 0.0  ;;  %v819_v58 = vmax.f32 %v815_v56, 0.0  ;;  %v1326_v41 = vpop.eup %1325 }
 0x699   :  { %v811_v22 = vpop.xlane.xlu0 %810  ;;  %v809_v44 = vpop.xlane.xlu1 %808  ;;  %v524_v5 = vadd.f32 %v520_v53, %v440_v61 }
 0x69a   :  { %v858_v40 = vadd.f32 %v854_v48, %v774_v12  ;;  %v824_v35 = vmin.f32 %v811_v22, %v820_v63  ;;  %v898_v16 = vsub.f32 10.0, %v2359_v62  ;;  %v823_v21 = vmin.f32 %v809_v44, %v819_v58  ;;  %v1328_v4 = vpop.eup %1327 }
 0x69b   :  { %v608_v29 = vadd.f32 %v604_v19, %v524_v5 }
 0x69c   :  { %v2366_v20 = vadd.f32 %v824_v35, %v780_v37  ;;  %v902_v52 = vmax.f32 %v898_v16, 0.0  ;;  %v855_v14 = vmul.f32 %v1326_v41, %v823_v21  ;;  %v2368_v39 = vadd.f32 %v823_v21, %v779_v30  ;;  %v1330_v12 = vpop.eup %1329 }
 0x69d   :  { %v891_v9 = vpop.xlane.xlu0 %890  ;;  %v2370_v24 = vpop.xlane.xlu1 %812  ;;  %v692_v37 = vadd.f32 %v688_v11, %v608_v29  ;;  %v856_v23 = vmul.f32 %v1328_v4, %v824_v35  ;;  %v569_v30 = vmax.f32 %v565_v57, 0.0  ;;  %v325_v21 = vmax.f32 %v1736_v10, 0.2 }
 0x69e   :  { %v2372_v7 = vmin.f32 %v891_v9, %v902_v52  ;;  %v900_v25 = vsub.f32 10.0, %v2366_v20  ;;  %v859_v32 = vadd.f32 %v855_v14, %v775_v49  ;;  %v899_v3 = vsub.f32 10.0, %v2368_v39  ;;  %v1332_v53 = vpop.eup %1331 }
 0x69f   :  { %v776_v55 = vadd.f32 %v772_v42, %v692_v37  ;;  %v2385_v61 = vmin.f32 %v2328_v26, %v569_v30  ;;  %v409_v26 = vmax.f32 %v1790_v31, 0.2  ;;  %v1172_v5 = vadd.f32 -0.2, %v325_v21  ;;  %v2626_v30 = vld [vmem:[#allocation15_spill] sm:$0xff] }
 0x6a0   :  { %v938_v33 = vmul.f32 %v1330_v12, %v2372_v7  ;;  %v904_v1 = vmax.f32 %v900_v25, 0.0  ;;  %v903_v50 = vmax.f32 %v899_v3, 0.0  ;;  %v1334_v49 = vpop.eup %1333  ;;  %v493_v11 = vmax.f32 %v1834_v15, 0.2 }
 0x6a1   :  { %v895_v54 = vpop.xlane.xlu0 %894  ;;  %v893_v47 = vpop.xlane.xlu1 %892  ;;  %v860_v63 = vadd.f32 %v856_v23, %v776_v55  ;;  %v1180_v4 = vadd.f32 -0.2, %v409_v26  ;;  %v577_v57 = vmax.f32 %v1878_v59, 0.2  ;;  %v661_v9 = vmax.f32 %v1922_v60, 0.2 }
 0x6a2   :  { %v2377_v56 = vadd.f32 %v938_v33, %v858_v40  ;;  %v2379_v17 = vmin.f32 %v895_v54, %v904_v1  ;;  %v2381_v48 = vmin.f32 %v893_v47, %v903_v50  ;;  %v613_v40 = vadd.f32 %v2385_v61, %v529_v36  ;;  %v2625_v33 = vld [vmem:[#allocation36_spill] sm:$0xff] }
 0x6a3   :  { %v333_v36 = vmul.f32 %v1172_v5, %v1172_v5  ;;  %v1188_v14 = vadd.f32 -0.2, %v493_v11  ;;  %v417_v10 = vmul.f32 %v1180_v4, %v1180_v4  ;;  %v1196_v29 = vadd.f32 -0.2, %v577_v57 }
 0x6a4   :  { %v940_v2 = vmul.f32 %v1332_v53, %v2379_v17  ;;  %v939_v58 = vmul.f32 %v1334_v49, %v2381_v48  ;;  %v649_v44 = vsub.f32 10.0, %v613_v40  ;;  %v745_v31 = vmax.f32 %v2612_v0, 0.2 }
 0x6a5   :  { %v337_v42 = vmul.f32 64.0, %v333_v36  ;;  %v501_v25 = vmul.f32 %v1188_v14, %v1188_v14  ;;  %v1204_v15 = vadd.f32 -0.2, %v661_v9  ;;  %v995_v59 = vmax.f32 %v2246_v45, 0.2 }
 0x6a6   :  { %v2388_v22 = vadd.f32 %v940_v2, %v860_v63  ;;  %v2390_v19 = vadd.f32 %v939_v58, %v859_v32  ;;  %v653_v35 = vmax.f32 %v649_v44, 0.0  ;;  %v829_v32 = vmax.f32 %v2618_v8, 0.2 }
 0x6a7   :  { %v421_v60 = vmul.f32 64.0, %v417_v10  ;;  %v585_v23 = vmul.f32 %v1196_v29, %v1196_v29  ;;  %v913_v1 = vmax.f32 %v2625_v33, 0.2  ;;  %v341_v50 = vsub.f32 %v337_v42, %v2626_v30 }
 0x6a8   :  { %v2394_v16 = vmin.f32 %v2344_v6, %v653_v35  ;;  %v994_v6 = vmax.f32 %v2235_v13, 0.2  ;;  %v996_v13 = vmax.f32 %v2251_v34, 0.2  ;;  %v505_v0 = vmul.f32 64.0, %v501_v25 }
 0x6a9   :  { %v669_v54 = vmul.f32 %v1204_v15, %v1204_v15  ;;  %v1220_v55 = vadd.f32 -0.2, %v829_v32  ;;  %v1234_v53 = vadd.f32 -0.2, %v995_v59  ;;  %v425_v49 = vsub.f32 %v421_v60, %v2626_v30 }
 0x6aa   :  { %v697_v46 = vadd.f32 %v2394_v16, %v613_v40  ;;  %v1233_v3 = vadd.f32 -0.2, %v994_v6  ;;  %v589_v45 = vmul.f32 64.0, %v585_v23  ;;  %v1235_v63 = vadd.f32 -0.2, %v996_v13  ;;  %v2627_v40 = vld [vmem:[#allocation29_spill] sm:$0xff] }
 0x6ab   :  { %v1228_v58 = vadd.f32 -0.2, %v913_v1  ;;  %v997_v44 = vmax.f32 %v2627_v40, 0.2  ;;  %v348_v34 = vmul.f32 1.442695, %v341_v50  ;;  %v509_v35 = vsub.f32 %v505_v0, %v2626_v30  ;;  %v897_v40 = vpop.xlane.xlu1 %896 }
 0x6ac   :  { %v733_v41 = vsub.f32 10.0, %v697_v46  ;;  %v1002_v47 = vmul.f32 %v1233_v3, %v1233_v3  ;;  %v837_v21 = vmul.f32 %v1220_v55, %v1220_v55  ;;  %v1003_v26 = vmul.f32 %v1234_v53, %v1234_v53 }
 0x6ad   :  { %v432_v11 = vmul.f32 1.442695, %v425_v49  ;;  %v1004_v4 = vmul.f32 %v1235_v63, %v1235_v63  ;;  %v921_v36 = vmul.f32 %v1228_v58, %v1228_v58  ;;  %v1236_v14 = vadd.f32 -0.2, %v997_v44 }
 0x6ae   :  { %v737_v52 = vmax.f32 %v733_v41, 0.0  ;;  %v1006_v41 = vmul.f32 64.0, %v1002_v47  ;;  %1335 = vpow2.f32 %v348_v34  ;;  %v516_v9 = vmul.f32 1.442695, %v509_v35 }
 0x6af   :  { %v841_v10 = vmul.f32 64.0, %v837_v21  ;;  %1337 = vpow2.f32 %v432_v11  ;;  %v1008_v15 = vmul.f32 64.0, %v1004_v4  ;;  %v925_v3 = vmul.f32 64.0, %v921_v36 }
 0x6b0   :  { %v2404_v12 = vmin.f32 %v2354_v18, %v737_v52  ;;  %v1212_v18 = vadd.f32 -0.2, %v745_v31  ;;  %v593_v52 = vsub.f32 %v589_v45, %v2626_v30  ;;  %v1010_v29 = vsub.f32 %v1006_v41, %v2619_v51 }
 0x6b1   :  { %v1007_v31 = vmul.f32 64.0, %v1003_v26  ;;  %v1005_v59 = vmul.f32 %v1236_v14, %v1236_v14  ;;  %1339 = vpow2.f32 %v516_v9  ;;  %v845_v23 = vsub.f32 %v841_v10, %v2626_v30  ;;  %v2629_v26 = vld [vmem:[#allocation32_spill] sm:$0xff] }
 0x6b2   :  { %v781_v37 = vadd.f32 %v2404_v12, %v697_v46  ;;  %v753_v2 = vmul.f32 %v1212_v18, %v1212_v18  ;;  %v673_v46 = vmul.f32 64.0, %v669_v54  ;;  %v600_v25 = vmul.f32 1.442695, %v593_v52 }
 0x6b3   :  { %v1014_v13 = vmul.f32 1.442695, %v1010_v29  ;;  %v1011_v18 = vsub.f32 %v1007_v31, %v2621_v43  ;;  %v929_v50 = vsub.f32 %v925_v3, %v2626_v30  ;;  %v1009_v0 = vmul.f32 64.0, %v1005_v59 }
 0x6b4   :  { %v817_v8 = vsub.f32 10.0, %v781_v37  ;;  %v757_v57 = vmul.f32 64.0, %v753_v2  ;;  %v677_v6 = vsub.f32 %v673_v46, %v2626_v30  ;;  %1341 = vpow2.f32 %v600_v25  ;;  %v2628_v2 = vld [vmem:[#allocation28_spill] sm:$0xff] }
 0x6b5   :  { %v852_v54 = vmul.f32 1.442695, %v845_v23  ;;  %v1016_v55 = vmul.f32 1.442695, %v1011_v18  ;;  %v1013_v49 = vsub.f32 %v1009_v0, %v2626_v30  ;;  %v947_v35 = vadd.f32 %v2381_v48, %v2368_v39 }
 0x6b6   :  { %v821_v5 = vmax.f32 %v817_v8, 0.0  ;;  %v761_v32 = vsub.f32 %v757_v57, %v2626_v30  ;;  %v684_v60 = vmul.f32 1.442695, %v677_v6  ;;  %v936_v8 = vmul.f32 1.442695, %v929_v50 }
 0x6b7   :  { %v1020_v34 = vmul.f32 1.442695, %v1013_v49  ;;  %v983_v57 = vsub.f32 10.0, %v947_v35 }
 0x6b8   :  { %v2420_v42 = vmin.f32 %v2370_v24, %v821_v5  ;;  %v1012_v24 = vsub.f32 %v1008_v15, %v2620_v38  ;;  %v768_v1 = vmul.f32 1.442695, %v761_v32  ;;  %1343 = vpow2.f32 %v684_v60 }
 0x6b9   :  { %1345 = vpow2.f32 %v1014_v13  ;;  %v987_v31 = vmax.f32 %v983_v57, 0.0 }
 0x6ba   :  { %v865_v33 = vadd.f32 %v2420_v42, %v781_v37  ;;  %v1018_v53 = vmul.f32 1.442695, %v1012_v24  ;;  %1347 = vpow2.f32 %v768_v1  ;;  %v946_v37 = vadd.f32 %v2372_v7, %v2359_v62 }
 0x6bb   :  { %1349 = vpow2.f32 %v852_v54  ;;  %v1336_v45 = vpop.eup %1335  ;;  %v948_v62 = vadd.f32 %v2379_v17, %v2366_v20 }
 0x6bc   :  { %v901_v47 = vsub.f32 10.0, %v865_v33  ;;  %1351 = vpow2.f32 %v1016_v55  ;;  %v353_v58 = vmul.f32 %v1336_v45, %v2628_v2  ;;  %v1338_v44 = vpop.eup %1337  ;;  %v982_v46 = vsub.f32 10.0, %v946_v37 }
 0x6bd   :  { %1353 = vpow2.f32 %v1018_v53  ;;  %v437_v21 = vmul.f32 %v1338_v44, %v2326_v27  ;;  %v984_v48 = vsub.f32 10.0, %v948_v62 }
 0x6be   :  { %v905_v63 = vmax.f32 %v901_v47, 0.0  ;;  %1355 = vpow2.f32 %v936_v8  ;;  %v1340_v7 = vpop.eup %1339  ;;  %v357_v5 = vadd.f32 %v353_v58, %v2629_v26  ;;  %v986_v4 = vmax.f32 %v982_v46, 0.0  ;;  %v2631_v46 = vld [vmem:[#allocation16_spill] sm:$0xff]  ;;  %v2634_v26 = vld [vmem:[#allocation21_spill] sm:$0xff] }
 0x6bf   :  { %v521_v11 = vmul.f32 %v1340_v7, %v2352_v28  ;;  %1357 = vpow2.f32 %v1020_v34  ;;  %v988_v32 = vmax.f32 %v984_v48, 0.0  ;;  %vm2632_vm2 = vcmp.gt.f32.partialorder %v2631_v46, 20.0 }
 0x6c0   :  { %v909_v41 = vmin.f32 %v897_v40, %v905_v63  ;;  %v441_v36 = vadd.f32 %v437_v21, %v357_v5  ;;  %v2635_v5 = vld [vmem:[#allocation17_spill] sm:$0xff] }
 0x6c1   :  { %v1342_v52 = vpop.eup %1341  ;;  %vm2636_vm4 = vcmp.gt.f32.partialorder %v2635_v5, 20.0 }
 0x6c2   :  { %v605_v14 = vmul.f32 %v1342_v52, %v2385_v61  ;;  %v949_v27 = vadd.f32 %v909_v41, %v865_v33  ;;  %v525_v20 = vadd.f32 %v521_v11, %v441_v36 }
 0x6c4   :  { %v609_v28 = vadd.f32 %v605_v14, %v525_v20  ;;  %v985_v13 = vsub.f32 10.0, %v949_v27 }
 0x6c5   :  { %v1344_v9 = vpop.eup %1343 }
 0x6c6   :  { %v1346_v10 = vpop.eup %1345  ;;  %v689_v17 = vmul.f32 %v1344_v9, %v2394_v16 }
 0x6c7   :  { %v1348_v25 = vpop.eup %1347 }
 0x6c8   :  { %v1350_v3 = vpop.eup %1349  ;;  %v773_v59 = vmul.f32 %v1348_v25, %v2404_v12  ;;  %v693_v1 = vadd.f32 %v689_v17, %v609_v28  ;;  %v989_v12 = vmax.f32 %v985_v13, 0.0 }
 0x6c9   :  { %v1352_v18 = vpop.eup %1351  ;;  %v857_v16 = vmul.f32 %v1350_v3, %v2420_v42 }
 0x6ca   :  { %v1354_v24 = vpop.eup %1353  ;;  %v777_v55 = vadd.f32 %v773_v59, %v693_v1 }
 0x6cb   :  { %v1356_v0 = vpop.eup %1355 }
 0x6cc   :  { %v941_v47 = vmul.f32 %v1356_v0, %v909_v41  ;;  %v861_v49 = vadd.f32 %v857_v16, %v777_v55  ;;  %v1358_v45 = vpop.eup %1357 }
 0x6ce   :  { %v945_v63 = vadd.f32 %v941_v47, %v861_v49 }
 0x6e9   :  { %v975_v39 = vpop.xlane.xlu0 %974 }
 0x6ea   :  { %v990_v6 = vmin.f32 %v975_v39, %v986_v4  ;;  %v2639_v4 = vld [vmem:[#allocation18_spill] sm:$0xff]  ;;  %v2642_v39 = vld [vmem:[#allocation27_spill] sm:$0xff] }
 0x6eb   :  { %vm2640_vm11 = vcmp.gt.f32.partialorder %v2639_v4, 20.0 }
 0x6ec   :  { %v1022_v29 = vmul.f32 %v1346_v10, %v990_v6 }
 0x6ed   :  { %v977_v15 = vpop.xlane.xlu1 %976  ;;  %v979_v23 = vpop.xlane.xlu0 %978 }
 0x6ee   :  { %v1026_v61 = vadd.f32 %v1022_v29, %v2377_v56  ;;  %v991_v60 = vmin.f32 %v977_v15, %v987_v31  ;;  %v992_v33 = vmin.f32 %v979_v23, %v988_v32 }
 0x6f0   :  { %1359 = vlog2.f32 %v1026_v61  ;;  %v1023_v50 = vmul.f32 %v1352_v18, %v991_v60  ;;  %v1024_v54 = vmul.f32 %v1354_v24, %v992_v33 }
 0x6f1   :  { %v981_v8 = vpop.xlane.xlu1 %980 }
 0x6f2   :  { %v1027_v53 = vadd.f32 %v1023_v50, %v2390_v19  ;;  %v1028_v56 = vadd.f32 %v1024_v54, %v2388_v22  ;;  %v993_v37 = vmin.f32 %v981_v8, %v989_v12  ;;  %v2630_v19 = vld [vmem:[#allocation20_spill] sm:$0xff] }
 0x6f4   :  { %1361 = vlog2.f32 %v1027_v53  ;;  %v1025_v2 = vmul.f32 %v1358_v45, %v993_v37 }
 0x6f5   :  { %1363 = vlog2.f32 %v1028_v56 }
 0x6f6   :  { %v1029_v42 = vadd.f32 %v1025_v2, %v945_v63 }
 0x6f8   :  { %1365 = vlog2.f32 %v1029_v42 }
 0x6fd   :  { %v1360_v58 = vpop.eup %1359 }
 0x6fe   :  { %v1031_v40 = vmul.f32 0.6931472, %v1360_v58 }
 0x700   :  { %v1038_v44 = vadd.f32 %v1031_v40, %v2619_v51  ;;  %v2638_v51 = vld [vmem:[#allocation25_spill] sm:$0xff] }
 0x701   :  { %v1362_v34 = vpop.eup %1361 }
 0x702   :  { %v1364_v35 = vpop.eup %1363  ;;  %v1042_v22 = vsel %vm2632_vm2, %v1038_v44, %v2630_v19  ;;  %v1033_v21 = vmul.f32 0.6931472, %v1362_v34 }
 0x703   :  { %1046 = vst.msk [vmem:[#allocation2] sm:$0xff] %vm2633_vm3, %v1042_v22  ;;  %v1035_v62 = vmul.f32 0.6931472, %v1364_v35 }
 0x704   :  { %v1039_v7 = vadd.f32 %v1033_v21, %v2621_v43  ;;  %v2643_v43 = vld [vmem:[#allocation19_spill] sm:$0xff] }
 0x705   :  { %v1040_v41 = vadd.f32 %v1035_v62, %v2620_v38  ;;  %v1366_v52 = vpop.eup %1365  ;;  %vm2644_vm6 = vcmp.gt.f32.partialorder %v2643_v43, 20.0 }
 0x706   :  { %v1043_v11 = vsel %vm2636_vm4, %v1039_v7, %v2634_v26  ;;  %v1037_v36 = vmul.f32 0.6931472, %v1366_v52 }
 0x707   :  { %1047 = vst.msk [vmem:[#allocation2 + $0x8] sm:$0xff] %vm2637_vm10, %v1043_v11  ;;  %v1044_v57 = vsel %vm2640_vm11, %v1040_v41, %v2638_v51 }
 0x708   :  { %1048 = vst.msk [vmem:[#allocation2 + $0x10] sm:$0xff] %vm2641_vm5, %v1044_v57  ;;  %v1041_v14 = vadd.f32 %v1037_v36, %v2626_v30 }
 0x70a   :  { %v1045_v38 = vsel %vm2644_vm6, %v1041_v14, %v2642_v39 }
 0x70b   :  { %1049 = vst.msk [vmem:[#allocation2 + $0x18] sm:$0xff] %vm2645_vm14, %v1045_v38 }
 0x70c PF:  { %v1050_v48 = vld [vmem:[#allocation2] sm:$0xff]  ;;  %v2646_v10 = vld [vmem:[#allocation22_spill] sm:$0xff]  ;;  %v2647_v17 = vld [vmem:[#allocation23_spill] sm:$0xff]  ;;  %vm2654_vm12 = vcmask 7168   ;;  %s1455_s1 = smov [#allocation8]   ;;  %vm1131_vm2 = vcmask 0  }
 0x70d   :  { %v2467_v20 = vadd.f32 %v1050_v48, %v2646_v10  ;;  %v2648_v31 = vld [vmem:[#allocation24_spill] sm:$0xff]  ;;  %vm2655_vm13 = vmmov %vm2654_vm12  ;;  %s1139_s21 = sshll.u32 %s1455_s1, 4  ;;  %s1140_s21 = int_to_ptr.vmem [resolvable:$true] %s1139_s21 }
 0x70e   :  { %v1051_v9 = vld [vmem:[#allocation2 + $0x8] sm:$0xff]  ;;  %vm2656_vm0 = vmmov %vm2654_vm12  ;;  %s1423_s22 = scalar_lea.vmem %s1140_s21, 16  ;;  %s1427_s23 = scalar_lea.vmem %s1140_s21, 32 }
 0x70f   :  { %v2470_v29 = vadd.f32 %v1051_v9, %v2647_v17  ;;  %v2649_v30 = vld [vmem:[#allocation26_spill] sm:$0xff]  ;;  %v1062_v15 = vand.u32 2147483647, %v2467_v20  ;;  %v1058_v19 = vmax.f32 %v2467_v20, 0.0  ;;  %vm2657_vm1 = vmmov %vm2656_vm0  ;;  %p1424_p11 = scmp.ne.s32.totalorder %s1140_s21, %s1423_s22  ;;  %p1428_p12 = scmp.lt.s32.totalorder %s1140_s21, %s1140_s21 }
 0x710   :  { %v1052_v27 = vld [vmem:[#allocation2 + $0x10] sm:$0xff]  ;;  %p1429_p13 = scmp.lt.s32.totalorder %s1427_s23, %s1423_s22 }
 0x711   :  { %v2473_v25 = vadd.f32 %v1052_v27, %v2648_v31  ;;  %v1063_v32 = vand.u32 2147483647, %v2470_v29  ;;  %v1066_v61 = vsub.f32 0.0, %v1062_v15  ;;  %v1059_v7 = vmax.f32 %v2470_v29, 0.0 }
 0x712   :  { %v1053_v6 = vld [vmem:[#allocation2 + $0x18] sm:$0xff]  ;;  %p1430_p0 = por %p1429_p13, %p1428_p12 }
 0x713   :  { %v2476_v28 = vadd.f32 %v1053_v6, %v2649_v30  ;;  %v1064_v3 = vand.u32 2147483647, %v2473_v25  ;;  %v1067_v60 = vsub.f32 0.0, %v1063_v32  ;;  %v1070_v18 = vmul.f32 1.442695, %v1066_v61 }
 0x714   :  { %v1060_v52 = vmax.f32 %v2473_v25, 0.0  ;;  %p1431_p1 = pnand %p1430_p0, %p1424_p11 }
 0x715   :  { %v1065_v59 = vand.u32 2147483647, %v2476_v28  ;;  %v1068_v23 = vsub.f32 0.0, %v1064_v3  ;;  %v1072_v33 = vmul.f32 1.442695, %v1067_v60  ;;  %1367 = vpow2.f32 %v1070_v18 }
 0x716   :  { %v1061_v39 = vmax.f32 %v2476_v28, 0.0 }
 0x717   :  { %v1069_v13 = vsub.f32 0.0, %v1065_v59  ;;  %v1074_v24 = vmul.f32 1.442695, %v1068_v23  ;;  %1369 = vpow2.f32 %v1072_v33 }
 0x719   :  { %v1076_v1 = vmul.f32 1.442695, %v1069_v13  ;;  %1371 = vpow2.f32 %v1074_v24 }
 0x71b   :  { %1373 = vpow2.f32 %v1076_v1 }
 0x722   :  { %v1368_v16 = vpop.eup %1367 }
 0x723   :  { %v1078_v0 = vadd.f32 1.0, %v1368_v16  ;;  %v1081_v56 = vmul.f32 -0.5, %v1368_v16  ;;  %v1084_v63 = vand.u32 2147483647, %v1368_v16 }
 0x724   :  { %v1370_v50 = vpop.eup %1369 }
 0x725   :  { %v1087_v55 = vadd.f32 1.0, %v1370_v50  ;;  %1375 = vlog2.f32 %v1078_v0  ;;  %v1090_v8 = vmul.f32 -0.5, %v1370_v50  ;;  %v1082_v37 = vadd.f32 1.0, %v1081_v56 }
 0x726   :  { %v1372_v54 = vpop.eup %1371  ;;  %v1093_v42 = vand.u32 2147483647, %v1370_v50  ;;  %vm2483_vm15 = vcmp.lt.f32.partialorder %v1084_v63, 0.0004427343 }
 0x727   :  { %v1096_v53 = vadd.f32 1.0, %v1372_v54  ;;  %1377 = vlog2.f32 %v1087_v55  ;;  %v1099_v49 = vmul.f32 -0.5, %v1372_v54  ;;  %v1091_v2 = vadd.f32 1.0, %v1090_v8 }
 0x728   :  { %v1374_v47 = vpop.eup %1373  ;;  %v1102_v40 = vand.u32 2147483647, %v1372_v54  ;;  %v1083_v44 = vmul.f32 %v1368_v16, %v1082_v37  ;;  %vm2488_vm7 = vcmp.lt.f32.partialorder %v1093_v42, 0.0004427343 }
 0x729   :  { %1379 = vlog2.f32 %v1096_v53  ;;  %v1105_v12 = vadd.f32 1.0, %v1374_v47  ;;  %v1108_v45 = vmul.f32 -0.5, %v1374_v47  ;;  %v1100_v58 = vadd.f32 1.0, %v1099_v49 }
 0x72a   :  { %v1092_v22 = vmul.f32 %v1370_v50, %v1091_v2  ;;  %v1111_v21 = vand.u32 2147483647, %v1374_v47  ;;  %vm1103_vm8 = vcmp.lt.f32.partialorder %v1102_v40, 0.0004427343 }
 0x72b   :  { %1381 = vlog2.f32 %v1105_v12  ;;  %v1109_v34 = vadd.f32 1.0, %v1108_v45  ;;  %v1101_v5 = vmul.f32 %v1372_v54, %v1100_v58 }
 0x72c   :  { %vm1112_vm9 = vcmp.lt.f32.partialorder %v1111_v21, 0.0004427343 }
 0x72d   :  { %v1110_v36 = vmul.f32 %v1374_v47, %v1109_v34 }
 0x732   :  { %v1376_v35 = vpop.eup %1375 }
 0x733   :  { %v1080_v41 = vmul.f32 0.6931472, %v1376_v35 }
 0x734   :  { %v1378_v62 = vpop.eup %1377 }
 0x735   :  { %v1089_v51 = vmul.f32 0.6931472, %v1378_v62  ;;  %v1086_v4 = vsel %vm2483_vm15, %v1083_v44, %v1080_v41 }
 0x736   :  { %v1380_v11 = vpop.eup %1379  ;;  %v1114_v38 = vadd.f32 %v1086_v4, %v1058_v19 }
 0x737   :  { %v1098_v57 = vmul.f32 0.6931472, %v1380_v11  ;;  %v1095_v43 = vsel %vm2488_vm7, %v1092_v22, %v1089_v51 }
 0x738   :  { %v1382_v14 = vpop.eup %1381  ;;  %v1115_v27 = vadd.f32 %v1095_v43, %v1059_v7  ;;  %v1118_v10 = vsel %vm2654_vm12, %v1114_v38, 0.0 }
 0x739   :  { %v1104_v48 = vsel %vm1103_vm8, %v1101_v5, %v1098_v57  ;;  %v1107_v9 = vmul.f32 0.6931472, %v1382_v14 }
 0x73a   :  { %v1116_v6 = vadd.f32 %v1104_v48, %v1060_v52  ;;  %v1119_v17 = vsel %vm2655_vm13, %v1115_v27, 0.0 }
 0x73b   :  { %v1113_v20 = vsel %vm1112_vm9, %v1110_v36, %v1107_v9  ;;  %v1120_v31 = vadd.f32 %v1119_v17, %v1118_v10 }
 0x73c   :  { %v1117_v29 = vadd.f32 %v1113_v20, %v1061_v39  ;;  %v1121_v25 = vsel %vm2656_vm0, %v1116_v6, 0.0 }
 0x73d   :  { %v1122_v30 = vadd.f32 %v1121_v25, %v1120_v31 }
 0x73e   :  { %v1123_v28 = vsel %vm2657_vm1, %v1117_v29, 0.0 }
 0x73f   :  { %v1124_v15 = vadd.f32 %v1123_v28, %v1122_v30 }
 0x741   :  { %v1125_v32 = vrot.slane %v1124_v15, 4 }
 0x743   :  { %v1126_v3 = vadd.f32 %v1125_v32, %v1124_v15 }
 0x745   :  { %v1127_v59 = vrot.slane %v1126_v3, 2 }
 0x747   :  { %v1128_v61 = vadd.f32 %v1127_v59, %v1126_v3 }
 0x749   :  { %v1129_v60 = vrot.slane %v1128_v61, 1 }
 0x74b   :  { %v1130_v23 = vadd.f32 %v1129_v60, %v1128_v61 }
 0x74d   :  { %1132 = vst.msk [vmem:[#allocation8] sm:$0x1] %vm1131_vm2, %v1130_v23 }
 0x74e   :  { %1434 = shalt.err (!%p1431_p1)
}
 0x74f   :  { %1142 = dma.vmem_to_hbm [thread:$0]  %s1140_s21, 16, %s2507_s2, [#allocation5]  }
 0x750   :  { %1447 = dma.done.wait [#allocation5], 16  }
 0x751   :  { %1448 = vsyncadd [#allocation5], 4294967280 }
 0x752   :  { %1146 = vsyncpa [#allocation4], 1 }
 0x753   :  { %1147 = vsyncpa [#allocation7], 1 }
 0x754   :  { %1148 = vsyncpa [#allocation5], 1 }

</bundles_post_ra>
